<compile_context>
chip_gen: v7x
topology: tpu7x:2x2x1
jax: 0.10.0
libtpu: 0.0.40
codegen_flags: <defaults>
</compile_context>

<pallas_src>
import jax
import jax.numpy as jnp
from jax.experimental import pallas as pl
from jax.experimental.pallas import tpu as pltpu


_TAPS = tuple((dh, dw) for dh in (-1, 0, 1) for dw in (-1, 0, 1))  # row-major 3x3
_CENTER = 4
_PART_COUNTS = (1, 2, 3, 3)     # input parts per block: P1, P2, P3, C


def _round_up(x, m):
    return -(-x // m) * m


# ---------------------------------------------------------------------------
# Pallas kernel
# ---------------------------------------------------------------------------
def make_kernel(Cp, ow, M, use_bf16):
    mm_dtype = jnp.bfloat16 if use_bf16 else jnp.float32
    shifts = tuple(dh * ow + dw for dh, dw in _TAPS)

    def mm(a, b):
        return jnp.dot(a, b, preferred_element_type=jnp.float32)

    def kernel(x1_ref, x2_ref, x3_ref, x4_ref, masks_ref, *rest):
        # unpack per-block weights: K fused (2Cp,Cp) 1x1 slices + w2, w3, w4
        wts, idx = [], 0
        for K in _PART_COUNTS:
            wts.append(rest[idx:idx + K + 3])
            idx += K + 3
        y1_ref, y2_ref, y3_ref, y4_ref = rest[idx:idx + 4]
        im_ref = rest[idx + 4]                       # (9*Cp, M) scratch, mm_dtype

        x1 = x1_ref[...]
        x2 = x2_ref[...]
        x3 = x3_ref[...]
        x4 = x4_ref[...]
        x1m = x1.astype(mm_dtype)
        x2m = x2.astype(mm_dtype)
        x3m = x3.astype(mm_dtype)

        # hoisted sublane broadcast of the 8 non-center tap masks; reused by
        # all 8 conv3x3 invocations in this grid step.
        masks = masks_ref[...]                       # (9, M) mm_dtype, 1.0 = valid
        mb = [None if t == _CENTER else
              jnp.broadcast_to(masks[t:t + 1, :], (Cp, M)) for t in range(9)]

        def conv1x1(parts_m, w_list):
            # fused conv1||conv5, weight-split accumulation over input parts
            acc = None
            for p, w in zip(parts_m, w_list):
                term = mm(w, p)
                acc = term if acc is None else acc + term
            return acc                               # (2*Cp, M) f32

        def conv3x3(xm, w):
            # write the 9 shifted/masked taps into the sublane-aligned scratch
            im_ref[_CENTER * Cp:(_CENTER + 1) * Cp, :] = xm
            for t, s in enumerate(shifts):
                if t == _CENTER:
                    continue
                xs = pltpu.roll(xm, shift=(-s) % M, axis=1)
                im_ref[t * Cp:(t + 1) * Cp, :] = xs * mb[t]   # zero padding
            return mm(w, im_ref[...])                # single fused matmul, f32

        def inv_res_block(parts_m, wrefs):
            K = len(parts_m)
            w15 = [wrefs[j][...] for j in range(K)]
            w2 = wrefs[K][...]
            w3 = wrefs[K + 1][...]
            w4 = wrefs[K + 2][...]
            z = conv1x1(parts_m, w15)                # conv1 rows [:Cp], conv5 rows [Cp:]
            t = jnp.maximum(z[:Cp], 0.0).astype(mm_dtype)           # relu(conv1)
            t = jnp.maximum(conv3x3(t, w2), 0.0).astype(mm_dtype)   # relu(conv2)
            t = jnp.maximum(mm(w3, t), 0.0).astype(mm_dtype)        # relu(conv3)
            t = jnp.maximum(conv3x3(t, w4), 0.0)                    # relu(conv4), f32
            return z[Cp:] + t                        # conv5(x) + residual (f32)

        y2 = x2 - inv_res_block((x1m,), wts[0])
        y3 = x3 - inv_res_block((x1m, x2m), wts[1])
        y4 = x4 - inv_res_block((x1m, x2m, x3m), wts[2])
        y1 = x1 + inv_res_block((y2.astype(mm_dtype),
                                 y3.astype(mm_dtype),
                                 y4.astype(mm_dtype)), wts[3])

        y1_ref[...] = y1
        y2_ref[...] = y2
        y3_ref[...] = y3
        y4_ref[...] = y4

    return kernel


# ---------------------------------------------------------------------------
# Host-side weight packing: channel pad, conv1||conv5 fusion, bias folding.
# Bias channel: padded row BC = C is kept at 1.0 through every activation, so
# every conv bias becomes an ordinary weight column (no bias adds in-kernel).
# ---------------------------------------------------------------------------
def pack_params(params, C, Cp, use_bf16):
    dtype = jnp.bfloat16 if use_bf16 else jnp.float32
    BC = C
    packed = []
    for name, K in zip(("P1", "P2", "P3", "C"), _PART_COUNTS):
        w1, w2, w3, w4, w5, bias = params[name]          # bias: (5, C)
        for j in range(K):                               # fused conv1||conv5 slices
            wj = jnp.zeros((2 * Cp, Cp), jnp.float32)
            wj = wj.at[0:C, 0:C].set(w1[:, j * C:(j + 1) * C])
            wj = wj.at[Cp:Cp + C, 0:C].set(w5[:, j * C:(j + 1) * C])
            if j == 0:                                   # fold biases on part 0
                wj = wj.at[0:C, BC].set(bias[0])         # conv1 bias
                wj = wj.at[Cp:Cp + C, BC].set(bias[4])   # conv5 bias
                wj = wj.at[BC, BC].set(1.0)              # propagate bias channel
            packed.append(wj.astype(dtype))

        def pack3x3(w, b, propagate):
            wp = jnp.zeros((Cp, 9 * Cp), jnp.float32)
            for t in range(9):
                wp = wp.at[0:C, t * Cp:t * Cp + C].set(w[:, t * C:(t + 1) * C])
            wp = wp.at[0:C, _CENTER * Cp + BC].set(b)    # bias on center tap
            if propagate:
                wp = wp.at[BC, _CENTER * Cp + BC].set(1.0)
            return wp.astype(dtype)

        w2p = pack3x3(w2, bias[1], True)
        w3p = jnp.zeros((Cp, Cp), jnp.float32)
        w3p = w3p.at[0:C, 0:C].set(w3)
        w3p = w3p.at[0:C, BC].set(bias[2])
        w3p = w3p.at[BC, BC].set(1.0)
        w4p = pack3x3(w4, bias[3], False)   # row BC stays 0 -> block output row BC = 0
        packed.extend([w2p, w3p.astype(dtype), w4p])
    return packed


# ---------------------------------------------------------------------------
# Wrapper (glue: pixel-unshuffle + NCHW <-> padded (Cp, chunks*Mc) layout)
# ---------------------------------------------------------------------------
def _device_config():
    try:
        kind = jax.devices()[0].device_kind.lower()
    except Exception:
        kind = ""
    is_v7 = ("v7" in kind) or ("tpu7" in kind)
    is_v6 = "v6" in kind
    use_bf16 = is_v6 or is_v7                      # f32 on v5e / older / unknown
    vmem_cap = (48 if is_v7 else 100) * 1024 * 1024
    ws_target = (20 if is_v7 else 40) * 1024 * 1024
    return use_bf16, is_v7, vmem_cap, ws_target


def inv_block_pred_tran(x, params, force_bt=None):
    use_bf16, is_v7, vmem_cap, ws_target = _device_config()
    mm_dtype = jnp.bfloat16 if use_bf16 else jnp.float32
    mm_bytes = 2 if use_bf16 else 4
    sub_align = 16 if use_bf16 else 8

    b, c, h, w = x.shape
    oh, ow = h // 2, w // 2
    N = oh * ow
    C = c
    Cp = _round_up(C + 1, sub_align)               # +1 guarantees a free bias row
    BC = C

    w_packed = pack_params(params, C, Cp, use_bf16)
    w_bytes = sum(a.size * a.dtype.itemsize for a in w_packed)

    def ws_bytes(bt):
        mc = _round_up(bt * N, 128)
        io = 8 * Cp * mc * 4 + 9 * mc * mm_bytes           # 4 in + 4 out + masks
        scratch = 9 * Cp * mc * mm_bytes                   # im2col scratch
        live = 10 * Cp * mc * 4 + 15 * Cp * mc * mm_bytes  # z, x/y values, casts, mask bcast
        return 2 * io + w_bytes + scratch + live

    # ---- batch-chunk selection (v7x: force >=2 chunks so both TCs are used) ----
    divisors = [d for d in range(b, 0, -1) if b % d == 0]
    cands = [d for d in divisors
             if not (is_v7 and b > 1 and d > (b + 1) // 2)] or [1]
    Bt = next((d for d in cands if ws_bytes(d) <= ws_target), cands[-1])
    if force_bt is not None:
        assert b % force_bt == 0
        Bt = force_bt
    n_chunks = b // Bt
    Mc = _round_up(Bt * N, 128)                    # 128-aligned lane extent / chunk

    # pixel-unshuffle, identical to the PyTorch reshape/permute/reshape
    xs = x.reshape(b, c, oh, 2, ow, 2).transpose(0, 3, 5, 1, 2, 4)
    xs = xs.reshape(b, 4 * c, oh, ow).astype(jnp.float32)

    def layout(part):                              # (b, C, oh, ow) -> (Cp, chunks*Mc)
        p = part.transpose(1, 0, 2, 3).reshape(C, b, N)
        p = jnp.pad(p, ((0, Cp - C), (0, 0), (0, 0)))
        p = p.at[BC].set(1.0)                      # constant bias channel
        p = p.reshape(Cp, n_chunks, Bt * N)
        p = jnp.pad(p, ((0, 0), (0, 0), (0, Mc - Bt * N)))
        return p.reshape(Cp, n_chunks * Mc)

    parts = [layout(xs[:, i * c:(i + 1) * c]) for i in range(4)]

    # 9 border masks precomputed on host, one chunk's worth: (9, Mc)
    pidx = jnp.arange(N)
    hh, ww = pidx // ow, pidx % ow
    masks = jnp.stack([((hh + dh >= 0) & (hh + dh < oh) &
                        (ww + dw >= 0) & (ww + dw < ow)).astype(jnp.float32)
                       for dh, dw in _TAPS])
    masks = jnp.tile(masks, (1, Bt))
    masks = jnp.pad(masks, ((0, 0), (0, Mc - Bt * N))).astype(mm_dtype)

    def full_spec(a):
        nd = a.ndim
        return pl.BlockSpec(a.shape, lambda i, _n=nd: (0,) * _n)

    data_spec = pl.BlockSpec((Cp, Mc), lambda i: (0, i))
    in_specs = ([data_spec] * 4 + [full_spec(masks)]
                + [full_spec(a) for a in w_packed])
    out_specs = [pl.BlockSpec((Cp, Mc), lambda i: (0, i)) for _ in range(4)]
    out_shape = [jax.ShapeDtypeStruct((Cp, n_chunks * Mc), jnp.float32)
                 for _ in range(4)]

    # advisory cost estimate (matmul flops on the padded problem)
    Mtot = n_chunks * Mc
    flops = 0
    for K in _PART_COUNTS:
        flops += 2 * Mtot * (2 * Cp * K * Cp + Cp * 9 * Cp + Cp * Cp + Cp * 9 * Cp)
    bytes_accessed = int(8 * Cp * Mtot * 4 + n_chunks * (9 * Mc * mm_bytes + w_bytes))

    kernel = make_kernel(Cp, ow, Mc, use_bf16)
    vmem_limit = int(min(vmem_cap, max(32 * 1024 * 1024, 2 * ws_bytes(Bt))))

    y1, y2, y3, y4 = pl.pallas_call(
        kernel,
        out_shape=out_shape,
        grid=(n_chunks,),
        in_specs=in_specs,
        out_specs=out_specs,
        scratch_shapes=[pltpu.VMEM((9 * Cp, Mc), mm_dtype)],
        compiler_params=pltpu.CompilerParams(
            dimension_semantics=("parallel",),     # batch chunks are independent
            vmem_limit_bytes=vmem_limit,
        ),
        cost_estimate=pl.CostEstimate(flops=int(flops), transcendentals=0,
                                      bytes_accessed=bytes_accessed),
    )(*parts, masks, *w_packed)

    # back to NCHW, channel order [y1, y2, y3, y4]
    def unlayout(yk):
        yk = yk.reshape(Cp, n_chunks, Mc)[:C, :, :Bt * N]
        return yk.reshape(C, b, oh, ow).transpose(1, 0, 2, 3)

    return jnp.concatenate([unlayout(yk) for yk in (y1, y2, y3, y4)], axis=1)


# ---------------------------------------------------------------------------
# Deterministic parameter init (nn.Conv2d-equivalent shapes; 3x3 kernels are
# stored im2col-packed as (Cout, 9*Cin), taps row-major (dh, dw))
# ---------------------------------------------------------------------------
def init_params(key, C):
    params = {}
    for name, cin in (("P1", C), ("P2", 2 * C), ("P3", 3 * C), ("C", 3 * C)):
        key, k1, k2, k3, k4, k5, k6 = jax.random.split(key, 7)
        params[name] = (
            0.1 * jax.random.normal(k1, (C, cin), jnp.float32),     # conv1 (1x1)
            0.1 * jax.random.normal(k2, (C, 9 * C), jnp.float32),   # conv2 (3x3)
            0.1 * jax.random.normal(k3, (C, C), jnp.float32),       # conv3 (1x1)
            0.1 * jax.random.normal(k4, (C, 9 * C), jnp.float32),   # conv4 (3x3)
            0.1 * jax.random.normal(k5, (C, cin), jnp.float32),     # conv5 (1x1)
            0.1 * jax.random.normal(k6, (5, C), jnp.float32),       # biases conv1..5
        )
    return params


# ---------------------------------------------------------------------------
# Pure-JAX reference (for correctness check)
# ---------------------------------------------------------------------------
def _conv1x1_ref(x, w, b):
    return jnp.einsum("bhwi,oi->bhwo", x, w) + b


def _conv3x3_ref(x, w_packed, b):
    co = w_packed.shape[0]
    ci = w_packed.shape[1] // 9
    w_hwio = w_packed.reshape(co, 3, 3, ci).transpose(1, 2, 3, 0)
    y = jax.lax.conv_general_dilated(
        x, w_hwio, window_strides=(1, 1), padding=((1, 1), (1, 1)),
        dimension_numbers=("NHWC", "HWIO", "NHWC"))
    return y + b


def _inv_res_block_ref(x, prm):
    w1, w2, w3, w4, w5, bias = prm
    t = jax.nn.relu(_conv1x1_ref(x, w1, bias[0]))
    t = jax.nn.relu(_conv3x3_ref(t, w2, bias[1]))
    u = jax.nn.relu(_conv1x1_ref(t, w3, bias[2]))
    u = jax.nn.relu(_conv3x3_ref(u, w4, bias[3]))
    return _conv1x1_ref(x, w5, bias[4]) + u


def ref_forward(x, params):
    b, c, h, w = x.shape
    oh, ow = h // 2, w // 2
    xs = x.reshape(b, c, oh, 2, ow, 2).transpose(0, 3, 5, 1, 2, 4)
    xs = xs.reshape(b, 4 * c, oh, ow)
    x1, x2, x3, x4 = [xs[:, i * c:(i + 1) * c].transpose(0, 2, 3, 1)
                      for i in range(4)]
    y2 = x2 - _inv_res_block_ref(x1, params["P1"])
    y3 = x3 - _inv_res_block_ref(jnp.concatenate([x1, x2], -1), params["P2"])
    y4 = x4 - _inv_res_block_ref(jnp.concatenate([x1, x2, x3], -1), params["P3"])
    y1 = x1 + _inv_res_block_ref(jnp.concatenate([y2, y3, y4], -1), params["C"])
    out = jnp.concatenate([y1, y2, y3, y4], -1)
    return out.transpose(0, 3, 1, 2)


# ---------------------------------------------------------------------------
if __name__ == "__main__":
    use_bf16 = _device_config()[0]
    tol = 5e-2 if use_bf16 else 2e-3

    key = jax.random.PRNGKey(0)
    kx, kp, kx2 = jax.random.split(key, 3)

    # primary check: b=2, c=4, 16x16
    B, C, H, W = 2, 4, 16, 16
    x = jax.random.normal(kx, (B, C, H, W), jnp.float32)
    params = init_params(kp, C)
    out = jax.block_until_ready(inv_block_pred_tran(x, params))
    ref = ref_forward(x, params)
    assert out.shape == (B, 4 * C, H // 2, W // 2), out.shape
    err = float(jnp.max(jnp.abs(out - ref)))
    assert err < tol, f"mismatch vs reference (primary): max abs err {err}"

    # secondary check: multi-chunk grid (b > Bt), non-square oh != ow, and a
    # 128-padded lane axis — exercises the batch-folded roll + mask path.
    B2, H2, W2 = 3, 8, 12
    x2 = jax.random.normal(kx2, (B2, C, H2, W2), jnp.float32)
    out2 = jax.block_until_ready(inv_block_pred_tran(x2, params, force_bt=1))
    ref2 = ref_forward(x2, params)
    err2 = float(jnp.max(jnp.abs(out2 - ref2)))
    assert err2 < tol, f"mismatch vs reference (secondary): max abs err {err2}"

    print("KERNEL_OK")
</pallas_src>

<mosaic_0001>
module attributes {stable_mosaic.version = 11 : i64} {
  func.func @kernel(%arg0: i32, %arg1: memref<8x128xf32, #tpu.memory_space<vmem>>, %arg2: memref<8x128xf32, #tpu.memory_space<vmem>>, %arg3: memref<8x128xf32, #tpu.memory_space<vmem>>, %arg4: memref<8x128xf32, #tpu.memory_space<vmem>>, %arg5: memref<9x128xf32, #tpu.memory_space<vmem>>, %arg6: memref<16x8xf32, #tpu.memory_space<vmem>>, %arg7: memref<8x72xf32, #tpu.memory_space<vmem>>, %arg8: memref<8x8xf32, #tpu.memory_space<vmem>>, %arg9: memref<8x72xf32, #tpu.memory_space<vmem>>, %arg10: memref<16x8xf32, #tpu.memory_space<vmem>>, %arg11: memref<16x8xf32, #tpu.memory_space<vmem>>, %arg12: memref<8x72xf32, #tpu.memory_space<vmem>>, %arg13: memref<8x8xf32, #tpu.memory_space<vmem>>, %arg14: memref<8x72xf32, #tpu.memory_space<vmem>>, %arg15: memref<16x8xf32, #tpu.memory_space<vmem>>, %arg16: memref<16x8xf32, #tpu.memory_space<vmem>>, %arg17: memref<16x8xf32, #tpu.memory_space<vmem>>, %arg18: memref<8x72xf32, #tpu.memory_space<vmem>>, %arg19: memref<8x8xf32, #tpu.memory_space<vmem>>, %arg20: memref<8x72xf32, #tpu.memory_space<vmem>>, %arg21: memref<16x8xf32, #tpu.memory_space<vmem>>, %arg22: memref<16x8xf32, #tpu.memory_space<vmem>>, %arg23: memref<16x8xf32, #tpu.memory_space<vmem>>, %arg24: memref<8x72xf32, #tpu.memory_space<vmem>>, %arg25: memref<8x8xf32, #tpu.memory_space<vmem>>, %arg26: memref<8x72xf32, #tpu.memory_space<vmem>>, %arg27: memref<8x128xf32, #tpu.memory_space<vmem>>, %arg28: memref<8x128xf32, #tpu.memory_space<vmem>>, %arg29: memref<8x128xf32, #tpu.memory_space<vmem>>, %arg30: memref<8x128xf32, #tpu.memory_space<vmem>>, %arg31: memref<72x128xf32, #tpu.memory_space<vmem>>) attributes {dimension_semantics = [#tpu.dimension_semantics<parallel>], iteration_bounds = array<i64: 1>, scalar_prefetch = 0 : i64, scratch_operands = 1 : i64, tpu.core_type = #tpu.core_type<tc>, window_params = [{transform_indices = @transform_0, window_bounds = array<i64: 8, 128>}, {transform_indices = @transform_1, window_bounds = array<i64: 8, 128>}, {transform_indices = @transform_2, window_bounds = array<i64: 8, 128>}, {transform_indices = @transform_3, window_bounds = array<i64: 8, 128>}, {pipeline_mode = #tpu.pipeline_mode<synchronous>, transform_indices = @transform_4, window_bounds = array<i64: 9, 128>}, {pipeline_mode = #tpu.pipeline_mode<synchronous>, transform_indices = @transform_5, window_bounds = array<i64: 16, 8>}, {pipeline_mode = #tpu.pipeline_mode<synchronous>, transform_indices = @transform_6, window_bounds = array<i64: 8, 72>}, {pipeline_mode = #tpu.pipeline_mode<synchronous>, transform_indices = @transform_7, window_bounds = array<i64: 8, 8>}, {pipeline_mode = #tpu.pipeline_mode<synchronous>, transform_indices = @transform_8, window_bounds = array<i64: 8, 72>}, {pipeline_mode = #tpu.pipeline_mode<synchronous>, transform_indices = @transform_9, window_bounds = array<i64: 16, 8>}, {pipeline_mode = #tpu.pipeline_mode<synchronous>, transform_indices = @transform_10, window_bounds = array<i64: 16, 8>}, {pipeline_mode = #tpu.pipeline_mode<synchronous>, transform_indices = @transform_11, window_bounds = array<i64: 8, 72>}, {pipeline_mode = #tpu.pipeline_mode<synchronous>, transform_indices = @transform_12, window_bounds = array<i64: 8, 8>}, {pipeline_mode = #tpu.pipeline_mode<synchronous>, transform_indices = @transform_13, window_bounds = array<i64: 8, 72>}, {pipeline_mode = #tpu.pipeline_mode<synchronous>, transform_indices = @transform_14, window_bounds = array<i64: 16, 8>}, {pipeline_mode = #tpu.pipeline_mode<synchronous>, transform_indices = @transform_15, window_bounds = array<i64: 16, 8>}, {pipeline_mode = #tpu.pipeline_mode<synchronous>, transform_indices = @transform_16, window_bounds = array<i64: 16, 8>}, {pipeline_mode = #tpu.pipeline_mode<synchronous>, transform_indices = @transform_17, window_bounds = array<i64: 8, 72>}, {pipeline_mode = #tpu.pipeline_mode<synchronous>, transform_indices = @transform_18, window_bounds = array<i64: 8, 8>}, {pipeline_mode = #tpu.pipeline_mode<synchronous>, transform_indices = @transform_19, window_bounds = array<i64: 8, 72>}, {pipeline_mode = #tpu.pipeline_mode<synchronous>, transform_indices = @transform_20, window_bounds = array<i64: 16, 8>}, {pipeline_mode = #tpu.pipeline_mode<synchronous>, transform_indices = @transform_21, window_bounds = array<i64: 16, 8>}, {pipeline_mode = #tpu.pipeline_mode<synchronous>, transform_indices = @transform_22, window_bounds = array<i64: 16, 8>}, {pipeline_mode = #tpu.pipeline_mode<synchronous>, transform_indices = @transform_23, window_bounds = array<i64: 8, 72>}, {pipeline_mode = #tpu.pipeline_mode<synchronous>, transform_indices = @transform_24, window_bounds = array<i64: 8, 8>}, {pipeline_mode = #tpu.pipeline_mode<synchronous>, transform_indices = @transform_25, window_bounds = array<i64: 8, 72>}, {transform_indices = @transform_26, window_bounds = array<i64: 8, 128>}, {transform_indices = @transform_27, window_bounds = array<i64: 8, 128>}, {transform_indices = @transform_28, window_bounds = array<i64: 8, 128>}, {transform_indices = @transform_29, window_bounds = array<i64: 8, 128>}]} {
    %c0 = arith.constant 0 : index
    %c0_0 = arith.constant 0 : index
    %0 = vector.load %arg1[%c0, %c0_0] : memref<8x128xf32, #tpu.memory_space<vmem>>, vector<8x128xf32>
    %c0_1 = arith.constant 0 : index
    %c0_2 = arith.constant 0 : index
    %1 = vector.load %arg2[%c0_1, %c0_2] : memref<8x128xf32, #tpu.memory_space<vmem>>, vector<8x128xf32>
    %c0_3 = arith.constant 0 : index
    %c0_4 = arith.constant 0 : index
    %2 = vector.load %arg3[%c0_3, %c0_4] : memref<8x128xf32, #tpu.memory_space<vmem>>, vector<8x128xf32>
    %c0_5 = arith.constant 0 : index
    %c0_6 = arith.constant 0 : index
    %3 = vector.load %arg4[%c0_5, %c0_6] : memref<8x128xf32, #tpu.memory_space<vmem>>, vector<8x128xf32>
    %c0_7 = arith.constant 0 : index
    %c0_8 = arith.constant 0 : index
    %4 = vector.load %arg5[%c0_7, %c0_8] : memref<9x128xf32, #tpu.memory_space<vmem>>, vector<9x128xf32>
    %5 = vector.extract_strided_slice %4 {offsets = [0, 0], sizes = [1, 128], strides = [1, 1]} : vector<9x128xf32> to vector<1x128xf32>
    %6 = vector.shape_cast %5 : vector<1x128xf32> to vector<1x128xf32>
    %7 = vector.broadcast %6 : vector<1x128xf32> to vector<8x128xf32>
    %8 = vector.extract_strided_slice %4 {offsets = [1, 0], sizes = [1, 128], strides = [1, 1]} : vector<9x128xf32> to vector<1x128xf32>
    %9 = vector.shape_cast %8 : vector<1x128xf32> to vector<1x128xf32>
    %10 = vector.broadcast %9 : vector<1x128xf32> to vector<8x128xf32>
    %11 = vector.extract_strided_slice %4 {offsets = [2, 0], sizes = [1, 128], strides = [1, 1]} : vector<9x128xf32> to vector<1x128xf32>
    %12 = vector.shape_cast %11 : vector<1x128xf32> to vector<1x128xf32>
    %13 = vector.broadcast %12 : vector<1x128xf32> to vector<8x128xf32>
    %14 = vector.extract_strided_slice %4 {offsets = [3, 0], sizes = [1, 128], strides = [1, 1]} : vector<9x128xf32> to vector<1x128xf32>
    %15 = vector.shape_cast %14 : vector<1x128xf32> to vector<1x128xf32>
    %16 = vector.broadcast %15 : vector<1x128xf32> to vector<8x128xf32>
    %17 = vector.extract_strided_slice %4 {offsets = [5, 0], sizes = [1, 128], strides = [1, 1]} : vector<9x128xf32> to vector<1x128xf32>
    %18 = vector.shape_cast %17 : vector<1x128xf32> to vector<1x128xf32>
    %19 = vector.broadcast %18 : vector<1x128xf32> to vector<8x128xf32>
    %20 = vector.extract_strided_slice %4 {offsets = [6, 0], sizes = [1, 128], strides = [1, 1]} : vector<9x128xf32> to vector<1x128xf32>
    %21 = vector.shape_cast %20 : vector<1x128xf32> to vector<1x128xf32>
    %22 = vector.broadcast %21 : vector<1x128xf32> to vector<8x128xf32>
    %23 = vector.extract_strided_slice %4 {offsets = [7, 0], sizes = [1, 128], strides = [1, 1]} : vector<9x128xf32> to vector<1x128xf32>
    %24 = vector.shape_cast %23 : vector<1x128xf32> to vector<1x128xf32>
    %25 = vector.broadcast %24 : vector<1x128xf32> to vector<8x128xf32>
    %26 = vector.extract_strided_slice %4 {offsets = [8, 0], sizes = [1, 128], strides = [1, 1]} : vector<9x128xf32> to vector<1x128xf32>
    %27 = vector.shape_cast %26 : vector<1x128xf32> to vector<1x128xf32>
    %28 = vector.broadcast %27 : vector<1x128xf32> to vector<8x128xf32>
    %c0_9 = arith.constant 0 : index
    %c0_10 = arith.constant 0 : index
    %29 = vector.load %arg6[%c0_9, %c0_10] : memref<16x8xf32, #tpu.memory_space<vmem>>, vector<16x8xf32>
    %c0_11 = arith.constant 0 : index
    %c0_12 = arith.constant 0 : index
    %30 = vector.load %arg7[%c0_11, %c0_12] : memref<8x72xf32, #tpu.memory_space<vmem>>, vector<8x72xf32>
    %c0_13 = arith.constant 0 : index
    %c0_14 = arith.constant 0 : index
    %31 = vector.load %arg8[%c0_13, %c0_14] : memref<8x8xf32, #tpu.memory_space<vmem>>, vector<8x8xf32>
    %c0_15 = arith.constant 0 : index
    %c0_16 = arith.constant 0 : index
    %32 = vector.load %arg9[%c0_15, %c0_16] : memref<8x72xf32, #tpu.memory_space<vmem>>, vector<8x72xf32>
    %cst = arith.constant dense<0.000000e+00> : vector<16x128xf32>
    %33 = tpu.matmul %29, %0, %cst {dimension_numbers = #tpu.dot_dimension_numbers<[1], [0], [0], [1], [0, 0, 1, 1], [], []>} : vector<16x8xf32>, vector<8x128xf32>, vector<16x128xf32> -> vector<16x128xf32>
    %34 = vector.extract_strided_slice %33 {offsets = [0, 0], sizes = [8, 128], strides = [1, 1]} : vector<16x128xf32> to vector<8x128xf32>
    %cst_17 = arith.constant 0.000000e+00 : f32
    %35 = vector.broadcast %cst_17 : f32 to vector<8x128xf32>
    %36 = arith.maximumf %34, %35 : vector<8x128xf32>
    %c32 = arith.constant 32 : index
    %c0_18 = arith.constant 0 : index
    %37 = vector.load %arg31[%c32, %c0_18] : memref<72x128xf32, #tpu.memory_space<vmem>>, vector<8x128xf32>
    tpu.vector_store %arg31[%c32, %c0_18], %36 {strides = array<i32>} : memref<72x128xf32, #tpu.memory_space<vmem>>, vector<8x128xf32>,
    %c9_i32 = arith.constant 9 : i32
    %38 = tpu.dynamic_rotate %36 by %c9_i32 dim 1 : vector<8x128xf32>, i32 -> vector<8x128xf32>
    %39 = arith.mulf %38, %7 : vector<8x128xf32>
    %c0_19 = arith.constant 0 : index
    %c0_20 = arith.constant 0 : index
    %40 = vector.load %arg31[%c0_19, %c0_20] : memref<72x128xf32, #tpu.memory_space<vmem>>, vector<8x128xf32>
    tpu.vector_store %arg31[%c0_19, %c0_20], %39 {strides = array<i32>} : memref<72x128xf32, #tpu.memory_space<vmem>>, vector<8x128xf32>,
    %c8_i32 = arith.constant 8 : i32
    %41 = tpu.dynamic_rotate %36 by %c8_i32 dim 1 : vector<8x128xf32>, i32 -> vector<8x128xf32>
    %42 = arith.mulf %41, %10 : vector<8x128xf32>
    %c8 = arith.constant 8 : index
    %c0_21 = arith.constant 0 : index
    %43 = vector.load %arg31[%c8, %c0_21] : memref<72x128xf32, #tpu.memory_space<vmem>>, vector<8x128xf32>
    tpu.vector_store %arg31[%c8, %c0_21], %42 {strides = array<i32>} : memref<72x128xf32, #tpu.memory_space<vmem>>, vector<8x128xf32>,
    %c7_i32 = arith.constant 7 : i32
    %44 = tpu.dynamic_rotate %36 by %c7_i32 dim 1 : vector<8x128xf32>, i32 -> vector<8x128xf32>
    %45 = arith.mulf %44, %13 : vector<8x128xf32>
    %c16 = arith.constant 16 : index
    %c0_22 = arith.constant 0 : index
    %46 = vector.load %arg31[%c16, %c0_22] : memref<72x128xf32, #tpu.memory_space<vmem>>, vector<8x128xf32>
    tpu.vector_store %arg31[%c16, %c0_22], %45 {strides = array<i32>} : memref<72x128xf32, #tpu.memory_space<vmem>>, vector<8x128xf32>,
    %c1_i32 = arith.constant 1 : i32
    %47 = tpu.dynamic_rotate %36 by %c1_i32 dim 1 : vector<8x128xf32>, i32 -> vector<8x128xf32>
    %48 = arith.mulf %47, %16 : vector<8x128xf32>
    %c24 = arith.constant 24 : index
    %c0_23 = arith.constant 0 : index
    %49 = vector.load %arg31[%c24, %c0_23] : memref<72x128xf32, #tpu.memory_space<vmem>>, vector<8x128xf32>
    tpu.vector_store %arg31[%c24, %c0_23], %48 {strides = array<i32>} : memref<72x128xf32, #tpu.memory_space<vmem>>, vector<8x128xf32>,
    %c127_i32 = arith.constant 127 : i32
    %50 = tpu.dynamic_rotate %36 by %c127_i32 dim 1 : vector<8x128xf32>, i32 -> vector<8x128xf32>
    %51 = arith.mulf %50, %19 : vector<8x128xf32>
    %c40 = arith.constant 40 : index
    %c0_24 = arith.constant 0 : index
    %52 = vector.load %arg31[%c40, %c0_24] : memref<72x128xf32, #tpu.memory_space<vmem>>, vector<8x128xf32>
    tpu.vector_store %arg31[%c40, %c0_24], %51 {strides = array<i32>} : memref<72x128xf32, #tpu.memory_space<vmem>>, vector<8x128xf32>,
    %c121_i32 = arith.constant 121 : i32
    %53 = tpu.dynamic_rotate %36 by %c121_i32 dim 1 : vector<8x128xf32>, i32 -> vector<8x128xf32>
    %54 = arith.mulf %53, %22 : vector<8x128xf32>
    %c48 = arith.constant 48 : index
    %c0_25 = arith.constant 0 : index
    %55 = vector.load %arg31[%c48, %c0_25] : memref<72x128xf32, #tpu.memory_space<vmem>>, vector<8x128xf32>
    tpu.vector_store %arg31[%c48, %c0_25], %54 {strides = array<i32>} : memref<72x128xf32, #tpu.memory_space<vmem>>, vector<8x128xf32>,
    %c120_i32 = arith.constant 120 : i32
    %56 = tpu.dynamic_rotate %36 by %c120_i32 dim 1 : vector<8x128xf32>, i32 -> vector<8x128xf32>
    %57 = arith.mulf %56, %25 : vector<8x128xf32>
    %c56 = arith.constant 56 : index
    %c0_26 = arith.constant 0 : index
    %58 = vector.load %arg31[%c56, %c0_26] : memref<72x128xf32, #tpu.memory_space<vmem>>, vector<8x128xf32>
    tpu.vector_store %arg31[%c56, %c0_26], %57 {strides = array<i32>} : memref<72x128xf32, #tpu.memory_space<vmem>>, vector<8x128xf32>,
    %c119_i32 = arith.constant 119 : i32
    %59 = tpu.dynamic_rotate %36 by %c119_i32 dim 1 : vector<8x128xf32>, i32 -> vector<8x128xf32>
    %60 = arith.mulf %59, %28 : vector<8x128xf32>
    %c64 = arith.constant 64 : index
    %c0_27 = arith.constant 0 : index
    %61 = vector.load %arg31[%c64, %c0_27] : memref<72x128xf32, #tpu.memory_space<vmem>>, vector<8x128xf32>
    tpu.vector_store %arg31[%c64, %c0_27], %60 {strides = array<i32>} : memref<72x128xf32, #tpu.memory_space<vmem>>, vector<8x128xf32>,
    %c0_28 = arith.constant 0 : index
    %c0_29 = arith.constant 0 : index
    %62 = vector.load %arg31[%c0_28, %c0_29] : memref<72x128xf32, #tpu.memory_space<vmem>>, vector<72x128xf32>
    %cst_30 = arith.constant dense<0.000000e+00> : vector<8x128xf32>
    %63 = tpu.matmul %30, %62, %cst_30 {dimension_numbers = #tpu.dot_dimension_numbers<[1], [0], [0], [1], [0, 0, 1, 1], [], []>} : vector<8x72xf32>, vector<72x128xf32>, vector<8x128xf32> -> vector<8x128xf32>
    %cst_31 = arith.constant 0.000000e+00 : f32
    %64 = vector.broadcast %cst_31 : f32 to vector<8x128xf32>
    %65 = arith.maximumf %63, %64 : vector<8x128xf32>
    %cst_32 = arith.constant dense<0.000000e+00> : vector<8x128xf32>
    %66 = tpu.matmul %31, %65, %cst_32 {dimension_numbers = #tpu.dot_dimension_numbers<[1], [0], [0], [1], [0, 0, 1, 1], [], []>} : vector<8x8xf32>, vector<8x128xf32>, vector<8x128xf32> -> vector<8x128xf32>
    %cst_33 = arith.constant 0.000000e+00 : f32
    %67 = vector.broadcast %cst_33 : f32 to vector<8x128xf32>
    %68 = arith.maximumf %66, %67 : vector<8x128xf32>
    %c32_34 = arith.constant 32 : index
    %c0_35 = arith.constant 0 : index
    %69 = vector.load %arg31[%c32_34, %c0_35] : memref<72x128xf32, #tpu.memory_space<vmem>>, vector<8x128xf32>
    tpu.vector_store %arg31[%c32_34, %c0_35], %68 {strides = array<i32>} : memref<72x128xf32, #tpu.memory_space<vmem>>, vector<8x128xf32>,
    %c9_i32_36 = arith.constant 9 : i32
    %70 = tpu.dynamic_rotate %68 by %c9_i32_36 dim 1 : vector<8x128xf32>, i32 -> vector<8x128xf32>
    %71 = arith.mulf %70, %7 : vector<8x128xf32>
    %c0_37 = arith.constant 0 : index
    %c0_38 = arith.constant 0 : index
    %72 = vector.load %arg31[%c0_37, %c0_38] : memref<72x128xf32, #tpu.memory_space<vmem>>, vector<8x128xf32>
    tpu.vector_store %arg31[%c0_37, %c0_38], %71 {strides = array<i32>} : memref<72x128xf32, #tpu.memory_space<vmem>>, vector<8x128xf32>,
    %c8_i32_39 = arith.constant 8 : i32
    %73 = tpu.dynamic_rotate %68 by %c8_i32_39 dim 1 : vector<8x128xf32>, i32 -> vector<8x128xf32>
    %74 = arith.mulf %73, %10 : vector<8x128xf32>
    %c8_40 = arith.constant 8 : index
    %c0_41 = arith.constant 0 : index
    %75 = vector.load %arg31[%c8_40, %c0_41] : memref<72x128xf32, #tpu.memory_space<vmem>>, vector<8x128xf32>
    tpu.vector_store %arg31[%c8_40, %c0_41], %74 {strides = array<i32>} : memref<72x128xf32, #tpu.memory_space<vmem>>, vector<8x128xf32>,
    %c7_i32_42 = arith.constant 7 : i32
    %76 = tpu.dynamic_rotate %68 by %c7_i32_42 dim 1 : vector<8x128xf32>, i32 -> vector<8x128xf32>
    %77 = arith.mulf %76, %13 : vector<8x128xf32>
    %c16_43 = arith.constant 16 : index
    %c0_44 = arith.constant 0 : index
    %78 = vector.load %arg31[%c16_43, %c0_44] : memref<72x128xf32, #tpu.memory_space<vmem>>, vector<8x128xf32>
    tpu.vector_store %arg31[%c16_43, %c0_44], %77 {strides = array<i32>} : memref<72x128xf32, #tpu.memory_space<vmem>>, vector<8x128xf32>,
    %c1_i32_45 = arith.constant 1 : i32
    %79 = tpu.dynamic_rotate %68 by %c1_i32_45 dim 1 : vector<8x128xf32>, i32 -> vector<8x128xf32>
    %80 = arith.mulf %79, %16 : vector<8x128xf32>
    %c24_46 = arith.constant 24 : index
    %c0_47 = arith.constant 0 : index
    %81 = vector.load %arg31[%c24_46, %c0_47] : memref<72x128xf32, #tpu.memory_space<vmem>>, vector<8x128xf32>
    tpu.vector_store %arg31[%c24_46, %c0_47], %80 {strides = array<i32>} : memref<72x128xf32, #tpu.memory_space<vmem>>, vector<8x128xf32>,
    %c127_i32_48 = arith.constant 127 : i32
    %82 = tpu.dynamic_rotate %68 by %c127_i32_48 dim 1 : vector<8x128xf32>, i32 -> vector<8x128xf32>
    %83 = arith.mulf %82, %19 : vector<8x128xf32>
    %c40_49 = arith.constant 40 : index
    %c0_50 = arith.constant 0 : index
    %84 = vector.load %arg31[%c40_49, %c0_50] : memref<72x128xf32, #tpu.memory_space<vmem>>, vector<8x128xf32>
    tpu.vector_store %arg31[%c40_49, %c0_50], %83 {strides = array<i32>} : memref<72x128xf32, #tpu.memory_space<vmem>>, vector<8x128xf32>,
    %c121_i32_51 = arith.constant 121 : i32
    %85 = tpu.dynamic_rotate %68 by %c121_i32_51 dim 1 : vector<8x128xf32>, i32 -> vector<8x128xf32>
    %86 = arith.mulf %85, %22 : vector<8x128xf32>
    %c48_52 = arith.constant 48 : index
    %c0_53 = arith.constant 0 : index
    %87 = vector.load %arg31[%c48_52, %c0_53] : memref<72x128xf32, #tpu.memory_space<vmem>>, vector<8x128xf32>
    tpu.vector_store %arg31[%c48_52, %c0_53], %86 {strides = array<i32>} : memref<72x128xf32, #tpu.memory_space<vmem>>, vector<8x128xf32>,
    %c120_i32_54 = arith.constant 120 : i32
    %88 = tpu.dynamic_rotate %68 by %c120_i32_54 dim 1 : vector<8x128xf32>, i32 -> vector<8x128xf32>
    %89 = arith.mulf %88, %25 : vector<8x128xf32>
    %c56_55 = arith.constant 56 : index
    %c0_56 = arith.constant 0 : index
    %90 = vector.load %arg31[%c56_55, %c0_56] : memref<72x128xf32, #tpu.memory_space<vmem>>, vector<8x128xf32>
    tpu.vector_store %arg31[%c56_55, %c0_56], %89 {strides = array<i32>} : memref<72x128xf32, #tpu.memory_space<vmem>>, vector<8x128xf32>,
    %c119_i32_57 = arith.constant 119 : i32
    %91 = tpu.dynamic_rotate %68 by %c119_i32_57 dim 1 : vector<8x128xf32>, i32 -> vector<8x128xf32>
    %92 = arith.mulf %91, %28 : vector<8x128xf32>
    %c64_58 = arith.constant 64 : index
    %c0_59 = arith.constant 0 : index
    %93 = vector.load %arg31[%c64_58, %c0_59] : memref<72x128xf32, #tpu.memory_space<vmem>>, vector<8x128xf32>
    tpu.vector_store %arg31[%c64_58, %c0_59], %92 {strides = array<i32>} : memref<72x128xf32, #tpu.memory_space<vmem>>, vector<8x128xf32>,
    %c0_60 = arith.constant 0 : index
    %c0_61 = arith.constant 0 : index
    %94 = vector.load %arg31[%c0_60, %c0_61] : memref<72x128xf32, #tpu.memory_space<vmem>>, vector<72x128xf32>
    %cst_62 = arith.constant dense<0.000000e+00> : vector<8x128xf32>
    %95 = tpu.matmul %32, %94, %cst_62 {dimension_numbers = #tpu.dot_dimension_numbers<[1], [0], [0], [1], [0, 0, 1, 1], [], []>} : vector<8x72xf32>, vector<72x128xf32>, vector<8x128xf32> -> vector<8x128xf32>
    %cst_63 = arith.constant 0.000000e+00 : f32
    %96 = vector.broadcast %cst_63 : f32 to vector<8x128xf32>
    %97 = arith.maximumf %95, %96 : vector<8x128xf32>
    %98 = vector.extract_strided_slice %33 {offsets = [8, 0], sizes = [8, 128], strides = [1, 1]} : vector<16x128xf32> to vector<8x128xf32>
    %99 = arith.addf %98, %97 : vector<8x128xf32>
    %100 = arith.subf %1, %99 : vector<8x128xf32>
    %c0_64 = arith.constant 0 : index
    %c0_65 = arith.constant 0 : index
    %101 = vector.load %arg10[%c0_64, %c0_65] : memref<16x8xf32, #tpu.memory_space<vmem>>, vector<16x8xf32>
    %c0_66 = arith.constant 0 : index
    %c0_67 = arith.constant 0 : index
    %102 = vector.load %arg11[%c0_66, %c0_67] : memref<16x8xf32, #tpu.memory_space<vmem>>, vector<16x8xf32>
    %c0_68 = arith.constant 0 : index
    %c0_69 = arith.constant 0 : index
    %103 = vector.load %arg12[%c0_68, %c0_69] : memref<8x72xf32, #tpu.memory_space<vmem>>, vector<8x72xf32>
    %c0_70 = arith.constant 0 : index
    %c0_71 = arith.constant 0 : index
    %104 = vector.load %arg13[%c0_70, %c0_71] : memref<8x8xf32, #tpu.memory_space<vmem>>, vector<8x8xf32>
    %c0_72 = arith.constant 0 : index
    %c0_73 = arith.constant 0 : index
    %105 = vector.load %arg14[%c0_72, %c0_73] : memref<8x72xf32, #tpu.memory_space<vmem>>, vector<8x72xf32>
    %cst_74 = arith.constant dense<0.000000e+00> : vector<16x128xf32>
    %106 = tpu.matmul %101, %0, %cst_74 {dimension_numbers = #tpu.dot_dimension_numbers<[1], [0], [0], [1], [0, 0, 1, 1], [], []>} : vector<16x8xf32>, vector<8x128xf32>, vector<16x128xf32> -> vector<16x128xf32>
    %cst_75 = arith.constant dense<0.000000e+00> : vector<16x128xf32>
    %107 = tpu.matmul %102, %1, %cst_75 {dimension_numbers = #tpu.dot_dimension_numbers<[1], [0], [0], [1], [0, 0, 1, 1], [], []>} : vector<16x8xf32>, vector<8x128xf32>, vector<16x128xf32> -> vector<16x128xf32>
    %108 = arith.addf %106, %107 : vector<16x128xf32>
    %109 = vector.extract_strided_slice %108 {offsets = [0, 0], sizes = [8, 128], strides = [1, 1]} : vector<16x128xf32> to vector<8x128xf32>
    %cst_76 = arith.constant 0.000000e+00 : f32
    %110 = vector.broadcast %cst_76 : f32 to vector<8x128xf32>
    %111 = arith.maximumf %109, %110 : vector<8x128xf32>
    %c32_77 = arith.constant 32 : index
    %c0_78 = arith.constant 0 : index
    %112 = vector.load %arg31[%c32_77, %c0_78] : memref<72x128xf32, #tpu.memory_space<vmem>>, vector<8x128xf32>
    tpu.vector_store %arg31[%c32_77, %c0_78], %111 {strides = array<i32>} : memref<72x128xf32, #tpu.memory_space<vmem>>, vector<8x128xf32>,
    %c9_i32_79 = arith.constant 9 : i32
    %113 = tpu.dynamic_rotate %111 by %c9_i32_79 dim 1 : vector<8x128xf32>, i32 -> vector<8x128xf32>
    %114 = arith.mulf %113, %7 : vector<8x128xf32>
    %c0_80 = arith.constant 0 : index
    %c0_81 = arith.constant 0 : index
    %115 = vector.load %arg31[%c0_80, %c0_81] : memref<72x128xf32, #tpu.memory_space<vmem>>, vector<8x128xf32>
    tpu.vector_store %arg31[%c0_80, %c0_81], %114 {strides = array<i32>} : memref<72x128xf32, #tpu.memory_space<vmem>>, vector<8x128xf32>,
    %c8_i32_82 = arith.constant 8 : i32
    %116 = tpu.dynamic_rotate %111 by %c8_i32_82 dim 1 : vector<8x128xf32>, i32 -> vector<8x128xf32>
    %117 = arith.mulf %116, %10 : vector<8x128xf32>
    %c8_83 = arith.constant 8 : index
    %c0_84 = arith.constant 0 : index
    %118 = vector.load %arg31[%c8_83, %c0_84] : memref<72x128xf32, #tpu.memory_space<vmem>>, vector<8x128xf32>
    tpu.vector_store %arg31[%c8_83, %c0_84], %117 {strides = array<i32>} : memref<72x128xf32, #tpu.memory_space<vmem>>, vector<8x128xf32>,
    %c7_i32_85 = arith.constant 7 : i32
    %119 = tpu.dynamic_rotate %111 by %c7_i32_85 dim 1 : vector<8x128xf32>, i32 -> vector<8x128xf32>
    %120 = arith.mulf %119, %13 : vector<8x128xf32>
    %c16_86 = arith.constant 16 : index
    %c0_87 = arith.constant 0 : index
    %121 = vector.load %arg31[%c16_86, %c0_87] : memref<72x128xf32, #tpu.memory_space<vmem>>, vector<8x128xf32>
    tpu.vector_store %arg31[%c16_86, %c0_87], %120 {strides = array<i32>} : memref<72x128xf32, #tpu.memory_space<vmem>>, vector<8x128xf32>,
    %c1_i32_88 = arith.constant 1 : i32
    %122 = tpu.dynamic_rotate %111 by %c1_i32_88 dim 1 : vector<8x128xf32>, i32 -> vector<8x128xf32>
    %123 = arith.mulf %122, %16 : vector<8x128xf32>
    %c24_89 = arith.constant 24 : index
    %c0_90 = arith.constant 0 : index
    %124 = vector.load %arg31[%c24_89, %c0_90] : memref<72x128xf32, #tpu.memory_space<vmem>>, vector<8x128xf32>
    tpu.vector_store %arg31[%c24_89, %c0_90], %123 {strides = array<i32>} : memref<72x128xf32, #tpu.memory_space<vmem>>, vector<8x128xf32>,
    %c127_i32_91 = arith.constant 127 : i32
    %125 = tpu.dynamic_rotate %111 by %c127_i32_91 dim 1 : vector<8x128xf32>, i32 -> vector<8x128xf32>
    %126 = arith.mulf %125, %19 : vector<8x128xf32>
    %c40_92 = arith.constant 40 : index
    %c0_93 = arith.constant 0 : index
    %127 = vector.load %arg31[%c40_92, %c0_93] : memref<72x128xf32, #tpu.memory_space<vmem>>, vector<8x128xf32>
    tpu.vector_store %arg31[%c40_92, %c0_93], %126 {strides = array<i32>} : memref<72x128xf32, #tpu.memory_space<vmem>>, vector<8x128xf32>,
    %c121_i32_94 = arith.constant 121 : i32
    %128 = tpu.dynamic_rotate %111 by %c121_i32_94 dim 1 : vector<8x128xf32>, i32 -> vector<8x128xf32>
    %129 = arith.mulf %128, %22 : vector<8x128xf32>
    %c48_95 = arith.constant 48 : index
    %c0_96 = arith.constant 0 : index
    %130 = vector.load %arg31[%c48_95, %c0_96] : memref<72x128xf32, #tpu.memory_space<vmem>>, vector<8x128xf32>
    tpu.vector_store %arg31[%c48_95, %c0_96], %129 {strides = array<i32>} : memref<72x128xf32, #tpu.memory_space<vmem>>, vector<8x128xf32>,
    %c120_i32_97 = arith.constant 120 : i32
    %131 = tpu.dynamic_rotate %111 by %c120_i32_97 dim 1 : vector<8x128xf32>, i32 -> vector<8x128xf32>
    %132 = arith.mulf %131, %25 : vector<8x128xf32>
    %c56_98 = arith.constant 56 : index
    %c0_99 = arith.constant 0 : index
    %133 = vector.load %arg31[%c56_98, %c0_99] : memref<72x128xf32, #tpu.memory_space<vmem>>, vector<8x128xf32>
    tpu.vector_store %arg31[%c56_98, %c0_99], %132 {strides = array<i32>} : memref<72x128xf32, #tpu.memory_space<vmem>>, vector<8x128xf32>,
    %c119_i32_100 = arith.constant 119 : i32
    %134 = tpu.dynamic_rotate %111 by %c119_i32_100 dim 1 : vector<8x128xf32>, i32 -> vector<8x128xf32>
    %135 = arith.mulf %134, %28 : vector<8x128xf32>
    %c64_101 = arith.constant 64 : index
    %c0_102 = arith.constant 0 : index
    %136 = vector.load %arg31[%c64_101, %c0_102] : memref<72x128xf32, #tpu.memory_space<vmem>>, vector<8x128xf32>
    tpu.vector_store %arg31[%c64_101, %c0_102], %135 {strides = array<i32>} : memref<72x128xf32, #tpu.memory_space<vmem>>, vector<8x128xf32>,
    %c0_103 = arith.constant 0 : index
    %c0_104 = arith.constant 0 : index
    %137 = vector.load %arg31[%c0_103, %c0_104] : memref<72x128xf32, #tpu.memory_space<vmem>>, vector<72x128xf32>
    %cst_105 = arith.constant dense<0.000000e+00> : vector<8x128xf32>
    %138 = tpu.matmul %103, %137, %cst_105 {dimension_numbers = #tpu.dot_dimension_numbers<[1], [0], [0], [1], [0, 0, 1, 1], [], []>} : vector<8x72xf32>, vector<72x128xf32>, vector<8x128xf32> -> vector<8x128xf32>
    %cst_106 = arith.constant 0.000000e+00 : f32
    %139 = vector.broadcast %cst_106 : f32 to vector<8x128xf32>
    %140 = arith.maximumf %138, %139 : vector<8x128xf32>
    %cst_107 = arith.constant dense<0.000000e+00> : vector<8x128xf32>
    %141 = tpu.matmul %104, %140, %cst_107 {dimension_numbers = #tpu.dot_dimension_numbers<[1], [0], [0], [1], [0, 0, 1, 1], [], []>} : vector<8x8xf32>, vector<8x128xf32>, vector<8x128xf32> -> vector<8x128xf32>
    %cst_108 = arith.constant 0.000000e+00 : f32
    %142 = vector.broadcast %cst_108 : f32 to vector<8x128xf32>
    %143 = arith.maximumf %141, %142 : vector<8x128xf32>
    %c32_109 = arith.constant 32 : index
    %c0_110 = arith.constant 0 : index
    %144 = vector.load %arg31[%c32_109, %c0_110] : memref<72x128xf32, #tpu.memory_space<vmem>>, vector<8x128xf32>
    tpu.vector_store %arg31[%c32_109, %c0_110], %143 {strides = array<i32>} : memref<72x128xf32, #tpu.memory_space<vmem>>, vector<8x128xf32>,
    %c9_i32_111 = arith.constant 9 : i32
    %145 = tpu.dynamic_rotate %143 by %c9_i32_111 dim 1 : vector<8x128xf32>, i32 -> vector<8x128xf32>
    %146 = arith.mulf %145, %7 : vector<8x128xf32>
    %c0_112 = arith.constant 0 : index
    %c0_113 = arith.constant 0 : index
    %147 = vector.load %arg31[%c0_112, %c0_113] : memref<72x128xf32, #tpu.memory_space<vmem>>, vector<8x128xf32>
    tpu.vector_store %arg31[%c0_112, %c0_113], %146 {strides = array<i32>} : memref<72x128xf32, #tpu.memory_space<vmem>>, vector<8x128xf32>,
    %c8_i32_114 = arith.constant 8 : i32
    %148 = tpu.dynamic_rotate %143 by %c8_i32_114 dim 1 : vector<8x128xf32>, i32 -> vector<8x128xf32>
    %149 = arith.mulf %148, %10 : vector<8x128xf32>
    %c8_115 = arith.constant 8 : index
    %c0_116 = arith.constant 0 : index
    %150 = vector.load %arg31[%c8_115, %c0_116] : memref<72x128xf32, #tpu.memory_space<vmem>>, vector<8x128xf32>
    tpu.vector_store %arg31[%c8_115, %c0_116], %149 {strides = array<i32>} : memref<72x128xf32, #tpu.memory_space<vmem>>, vector<8x128xf32>,
    %c7_i32_117 = arith.constant 7 : i32
    %151 = tpu.dynamic_rotate %143 by %c7_i32_117 dim 1 : vector<8x128xf32>, i32 -> vector<8x128xf32>
    %152 = arith.mulf %151, %13 : vector<8x128xf32>
    %c16_118 = arith.constant 16 : index
    %c0_119 = arith.constant 0 : index
    %153 = vector.load %arg31[%c16_118, %c0_119] : memref<72x128xf32, #tpu.memory_space<vmem>>, vector<8x128xf32>
    tpu.vector_store %arg31[%c16_118, %c0_119], %152 {strides = array<i32>} : memref<72x128xf32, #tpu.memory_space<vmem>>, vector<8x128xf32>,
    %c1_i32_120 = arith.constant 1 : i32
    %154 = tpu.dynamic_rotate %143 by %c1_i32_120 dim 1 : vector<8x128xf32>, i32 -> vector<8x128xf32>
    %155 = arith.mulf %154, %16 : vector<8x128xf32>
    %c24_121 = arith.constant 24 : index
    %c0_122 = arith.constant 0 : index
    %156 = vector.load %arg31[%c24_121, %c0_122] : memref<72x128xf32, #tpu.memory_space<vmem>>, vector<8x128xf32>
    tpu.vector_store %arg31[%c24_121, %c0_122], %155 {strides = array<i32>} : memref<72x128xf32, #tpu.memory_space<vmem>>, vector<8x128xf32>,
    %c127_i32_123 = arith.constant 127 : i32
    %157 = tpu.dynamic_rotate %143 by %c127_i32_123 dim 1 : vector<8x128xf32>, i32 -> vector<8x128xf32>
    %158 = arith.mulf %157, %19 : vector<8x128xf32>
    %c40_124 = arith.constant 40 : index
    %c0_125 = arith.constant 0 : index
    %159 = vector.load %arg31[%c40_124, %c0_125] : memref<72x128xf32, #tpu.memory_space<vmem>>, vector<8x128xf32>
    tpu.vector_store %arg31[%c40_124, %c0_125], %158 {strides = array<i32>} : memref<72x128xf32, #tpu.memory_space<vmem>>, vector<8x128xf32>,
    %c121_i32_126 = arith.constant 121 : i32
    %160 = tpu.dynamic_rotate %143 by %c121_i32_126 dim 1 : vector<8x128xf32>, i32 -> vector<8x128xf32>
    %161 = arith.mulf %160, %22 : vector<8x128xf32>
    %c48_127 = arith.constant 48 : index
    %c0_128 = arith.constant 0 : index
    %162 = vector.load %arg31[%c48_127, %c0_128] : memref<72x128xf32, #tpu.memory_space<vmem>>, vector<8x128xf32>
    tpu.vector_store %arg31[%c48_127, %c0_128], %161 {strides = array<i32>} : memref<72x128xf32, #tpu.memory_space<vmem>>, vector<8x128xf32>,
    %c120_i32_129 = arith.constant 120 : i32
    %163 = tpu.dynamic_rotate %143 by %c120_i32_129 dim 1 : vector<8x128xf32>, i32 -> vector<8x128xf32>
    %164 = arith.mulf %163, %25 : vector<8x128xf32>
    %c56_130 = arith.constant 56 : index
    %c0_131 = arith.constant 0 : index
    %165 = vector.load %arg31[%c56_130, %c0_131] : memref<72x128xf32, #tpu.memory_space<vmem>>, vector<8x128xf32>
    tpu.vector_store %arg31[%c56_130, %c0_131], %164 {strides = array<i32>} : memref<72x128xf32, #tpu.memory_space<vmem>>, vector<8x128xf32>,
    %c119_i32_132 = arith.constant 119 : i32
    %166 = tpu.dynamic_rotate %143 by %c119_i32_132 dim 1 : vector<8x128xf32>, i32 -> vector<8x128xf32>
    %167 = arith.mulf %166, %28 : vector<8x128xf32>
    %c64_133 = arith.constant 64 : index
    %c0_134 = arith.constant 0 : index
    %168 = vector.load %arg31[%c64_133, %c0_134] : memref<72x128xf32, #tpu.memory_space<vmem>>, vector<8x128xf32>
    tpu.vector_store %arg31[%c64_133, %c0_134], %167 {strides = array<i32>} : memref<72x128xf32, #tpu.memory_space<vmem>>, vector<8x128xf32>,
    %c0_135 = arith.constant 0 : index
    %c0_136 = arith.constant 0 : index
    %169 = vector.load %arg31[%c0_135, %c0_136] : memref<72x128xf32, #tpu.memory_space<vmem>>, vector<72x128xf32>
    %cst_137 = arith.constant dense<0.000000e+00> : vector<8x128xf32>
    %170 = tpu.matmul %105, %169, %cst_137 {dimension_numbers = #tpu.dot_dimension_numbers<[1], [0], [0], [1], [0, 0, 1, 1], [], []>} : vector<8x72xf32>, vector<72x128xf32>, vector<8x128xf32> -> vector<8x128xf32>
    %cst_138 = arith.constant 0.000000e+00 : f32
    %171 = vector.broadcast %cst_138 : f32 to vector<8x128xf32>
    %172 = arith.maximumf %170, %171 : vector<8x128xf32>
    %173 = vector.extract_strided_slice %108 {offsets = [8, 0], sizes = [8, 128], strides = [1, 1]} : vector<16x128xf32> to vector<8x128xf32>
    %174 = arith.addf %173, %172 : vector<8x128xf32>
    %175 = arith.subf %2, %174 : vector<8x128xf32>
    %c0_139 = arith.constant 0 : index
    %c0_140 = arith.constant 0 : index
    %176 = vector.load %arg15[%c0_139, %c0_140] : memref<16x8xf32, #tpu.memory_space<vmem>>, vector<16x8xf32>
    %c0_141 = arith.constant 0 : index
    %c0_142 = arith.constant 0 : index
    %177 = vector.load %arg16[%c0_141, %c0_142] : memref<16x8xf32, #tpu.memory_space<vmem>>, vector<16x8xf32>
    %c0_143 = arith.constant 0 : index
    %c0_144 = arith.constant 0 : index
    %178 = vector.load %arg17[%c0_143, %c0_144] : memref<16x8xf32, #tpu.memory_space<vmem>>, vector<16x8xf32>
    %c0_145 = arith.constant 0 : index
    %c0_146 = arith.constant 0 : index
    %179 = vector.load %arg18[%c0_145, %c0_146] : memref<8x72xf32, #tpu.memory_space<vmem>>, vector<8x72xf32>
    %c0_147 = arith.constant 0 : index
    %c0_148 = arith.constant 0 : index
    %180 = vector.load %arg19[%c0_147, %c0_148] : memref<8x8xf32, #tpu.memory_space<vmem>>, vector<8x8xf32>
    %c0_149 = arith.constant 0 : index
    %c0_150 = arith.constant 0 : index
    %181 = vector.load %arg20[%c0_149, %c0_150] : memref<8x72xf32, #tpu.memory_space<vmem>>, vector<8x72xf32>
    %cst_151 = arith.constant dense<0.000000e+00> : vector<16x128xf32>
    %182 = tpu.matmul %176, %0, %cst_151 {dimension_numbers = #tpu.dot_dimension_numbers<[1], [0], [0], [1], [0, 0, 1, 1], [], []>} : vector<16x8xf32>, vector<8x128xf32>, vector<16x128xf32> -> vector<16x128xf32>
    %cst_152 = arith.constant dense<0.000000e+00> : vector<16x128xf32>
    %183 = tpu.matmul %177, %1, %cst_152 {dimension_numbers = #tpu.dot_dimension_numbers<[1], [0], [0], [1], [0, 0, 1, 1], [], []>} : vector<16x8xf32>, vector<8x128xf32>, vector<16x128xf32> -> vector<16x128xf32>
    %184 = arith.addf %182, %183 : vector<16x128xf32>
    %cst_153 = arith.constant dense<0.000000e+00> : vector<16x128xf32>
    %185 = tpu.matmul %178, %2, %cst_153 {dimension_numbers = #tpu.dot_dimension_numbers<[1], [0], [0], [1], [0, 0, 1, 1], [], []>} : vector<16x8xf32>, vector<8x128xf32>, vector<16x128xf32> -> vector<16x128xf32>
    %186 = arith.addf %184, %185 : vector<16x128xf32>
    %187 = vector.extract_strided_slice %186 {offsets = [0, 0], sizes = [8, 128], strides = [1, 1]} : vector<16x128xf32> to vector<8x128xf32>
    %cst_154 = arith.constant 0.000000e+00 : f32
    %188 = vector.broadcast %cst_154 : f32 to vector<8x128xf32>
    %189 = arith.maximumf %187, %188 : vector<8x128xf32>
    %c32_155 = arith.constant 32 : index
    %c0_156 = arith.constant 0 : index
    %190 = vector.load %arg31[%c32_155, %c0_156] : memref<72x128xf32, #tpu.memory_space<vmem>>, vector<8x128xf32>
    tpu.vector_store %arg31[%c32_155, %c0_156], %189 {strides = array<i32>} : memref<72x128xf32, #tpu.memory_space<vmem>>, vector<8x128xf32>,
    %c9_i32_157 = arith.constant 9 : i32
    %191 = tpu.dynamic_rotate %189 by %c9_i32_157 dim 1 : vector<8x128xf32>, i32 -> vector<8x128xf32>
    %192 = arith.mulf %191, %7 : vector<8x128xf32>
    %c0_158 = arith.constant 0 : index
    %c0_159 = arith.constant 0 : index
    %193 = vector.load %arg31[%c0_158, %c0_159] : memref<72x128xf32, #tpu.memory_space<vmem>>, vector<8x128xf32>
    tpu.vector_store %arg31[%c0_158, %c0_159], %192 {strides = array<i32>} : memref<72x128xf32, #tpu.memory_space<vmem>>, vector<8x128xf32>,
    %c8_i32_160 = arith.constant 8 : i32
    %194 = tpu.dynamic_rotate %189 by %c8_i32_160 dim 1 : vector<8x128xf32>, i32 -> vector<8x128xf32>
    %195 = arith.mulf %194, %10 : vector<8x128xf32>
    %c8_161 = arith.constant 8 : index
    %c0_162 = arith.constant 0 : index
    %196 = vector.load %arg31[%c8_161, %c0_162] : memref<72x128xf32, #tpu.memory_space<vmem>>, vector<8x128xf32>
    tpu.vector_store %arg31[%c8_161, %c0_162], %195 {strides = array<i32>} : memref<72x128xf32, #tpu.memory_space<vmem>>, vector<8x128xf32>,
    %c7_i32_163 = arith.constant 7 : i32
    %197 = tpu.dynamic_rotate %189 by %c7_i32_163 dim 1 : vector<8x128xf32>, i32 -> vector<8x128xf32>
    %198 = arith.mulf %197, %13 : vector<8x128xf32>
    %c16_164 = arith.constant 16 : index
    %c0_165 = arith.constant 0 : index
    %199 = vector.load %arg31[%c16_164, %c0_165] : memref<72x128xf32, #tpu.memory_space<vmem>>, vector<8x128xf32>
    tpu.vector_store %arg31[%c16_164, %c0_165], %198 {strides = array<i32>} : memref<72x128xf32, #tpu.memory_space<vmem>>, vector<8x128xf32>,
    %c1_i32_166 = arith.constant 1 : i32
    %200 = tpu.dynamic_rotate %189 by %c1_i32_166 dim 1 : vector<8x128xf32>, i32 -> vector<8x128xf32>
    %201 = arith.mulf %200, %16 : vector<8x128xf32>
    %c24_167 = arith.constant 24 : index
    %c0_168 = arith.constant 0 : index
    %202 = vector.load %arg31[%c24_167, %c0_168] : memref<72x128xf32, #tpu.memory_space<vmem>>, vector<8x128xf32>
    tpu.vector_store %arg31[%c24_167, %c0_168], %201 {strides = array<i32>} : memref<72x128xf32, #tpu.memory_space<vmem>>, vector<8x128xf32>,
    %c127_i32_169 = arith.constant 127 : i32
    %203 = tpu.dynamic_rotate %189 by %c127_i32_169 dim 1 : vector<8x128xf32>, i32 -> vector<8x128xf32>
    %204 = arith.mulf %203, %19 : vector<8x128xf32>
    %c40_170 = arith.constant 40 : index
    %c0_171 = arith.constant 0 : index
    %205 = vector.load %arg31[%c40_170, %c0_171] : memref<72x128xf32, #tpu.memory_space<vmem>>, vector<8x128xf32>
    tpu.vector_store %arg31[%c40_170, %c0_171], %204 {strides = array<i32>} : memref<72x128xf32, #tpu.memory_space<vmem>>, vector<8x128xf32>,
    %c121_i32_172 = arith.constant 121 : i32
    %206 = tpu.dynamic_rotate %189 by %c121_i32_172 dim 1 : vector<8x128xf32>, i32 -> vector<8x128xf32>
    %207 = arith.mulf %206, %22 : vector<8x128xf32>
    %c48_173 = arith.constant 48 : index
    %c0_174 = arith.constant 0 : index
    %208 = vector.load %arg31[%c48_173, %c0_174] : memref<72x128xf32, #tpu.memory_space<vmem>>, vector<8x128xf32>
    tpu.vector_store %arg31[%c48_173, %c0_174], %207 {strides = array<i32>} : memref<72x128xf32, #tpu.memory_space<vmem>>, vector<8x128xf32>,
    %c120_i32_175 = arith.constant 120 : i32
    %209 = tpu.dynamic_rotate %189 by %c120_i32_175 dim 1 : vector<8x128xf32>, i32 -> vector<8x128xf32>
    %210 = arith.mulf %209, %25 : vector<8x128xf32>
    %c56_176 = arith.constant 56 : index
    %c0_177 = arith.constant 0 : index
    %211 = vector.load %arg31[%c56_176, %c0_177] : memref<72x128xf32, #tpu.memory_space<vmem>>, vector<8x128xf32>
    tpu.vector_store %arg31[%c56_176, %c0_177], %210 {strides = array<i32>} : memref<72x128xf32, #tpu.memory_space<vmem>>, vector<8x128xf32>,
    %c119_i32_178 = arith.constant 119 : i32
    %212 = tpu.dynamic_rotate %189 by %c119_i32_178 dim 1 : vector<8x128xf32>, i32 -> vector<8x128xf32>
    %213 = arith.mulf %212, %28 : vector<8x128xf32>
    %c64_179 = arith.constant 64 : index
    %c0_180 = arith.constant 0 : index
    %214 = vector.load %arg31[%c64_179, %c0_180] : memref<72x128xf32, #tpu.memory_space<vmem>>, vector<8x128xf32>
    tpu.vector_store %arg31[%c64_179, %c0_180], %213 {strides = array<i32>} : memref<72x128xf32, #tpu.memory_space<vmem>>, vector<8x128xf32>,
    %c0_181 = arith.constant 0 : index
    %c0_182 = arith.constant 0 : index
    %215 = vector.load %arg31[%c0_181, %c0_182] : memref<72x128xf32, #tpu.memory_space<vmem>>, vector<72x128xf32>
    %cst_183 = arith.constant dense<0.000000e+00> : vector<8x128xf32>
    %216 = tpu.matmul %179, %215, %cst_183 {dimension_numbers = #tpu.dot_dimension_numbers<[1], [0], [0], [1], [0, 0, 1, 1], [], []>} : vector<8x72xf32>, vector<72x128xf32>, vector<8x128xf32> -> vector<8x128xf32>
    %cst_184 = arith.constant 0.000000e+00 : f32
    %217 = vector.broadcast %cst_184 : f32 to vector<8x128xf32>
    %218 = arith.maximumf %216, %217 : vector<8x128xf32>
    %cst_185 = arith.constant dense<0.000000e+00> : vector<8x128xf32>
    %219 = tpu.matmul %180, %218, %cst_185 {dimension_numbers = #tpu.dot_dimension_numbers<[1], [0], [0], [1], [0, 0, 1, 1], [], []>} : vector<8x8xf32>, vector<8x128xf32>, vector<8x128xf32> -> vector<8x128xf32>
    %cst_186 = arith.constant 0.000000e+00 : f32
    %220 = vector.broadcast %cst_186 : f32 to vector<8x128xf32>
    %221 = arith.maximumf %219, %220 : vector<8x128xf32>
    %c32_187 = arith.constant 32 : index
    %c0_188 = arith.constant 0 : index
    %222 = vector.load %arg31[%c32_187, %c0_188] : memref<72x128xf32, #tpu.memory_space<vmem>>, vector<8x128xf32>
    tpu.vector_store %arg31[%c32_187, %c0_188], %221 {strides = array<i32>} : memref<72x128xf32, #tpu.memory_space<vmem>>, vector<8x128xf32>,
    %c9_i32_189 = arith.constant 9 : i32
    %223 = tpu.dynamic_rotate %221 by %c9_i32_189 dim 1 : vector<8x128xf32>, i32 -> vector<8x128xf32>
    %224 = arith.mulf %223, %7 : vector<8x128xf32>
    %c0_190 = arith.constant 0 : index
    %c0_191 = arith.constant 0 : index
    %225 = vector.load %arg31[%c0_190, %c0_191] : memref<72x128xf32, #tpu.memory_space<vmem>>, vector<8x128xf32>
    tpu.vector_store %arg31[%c0_190, %c0_191], %224 {strides = array<i32>} : memref<72x128xf32, #tpu.memory_space<vmem>>, vector<8x128xf32>,
    %c8_i32_192 = arith.constant 8 : i32
    %226 = tpu.dynamic_rotate %221 by %c8_i32_192 dim 1 : vector<8x128xf32>, i32 -> vector<8x128xf32>
    %227 = arith.mulf %226, %10 : vector<8x128xf32>
    %c8_193 = arith.constant 8 : index
    %c0_194 = arith.constant 0 : index
    %228 = vector.load %arg31[%c8_193, %c0_194] : memref<72x128xf32, #tpu.memory_space<vmem>>, vector<8x128xf32>
    tpu.vector_store %arg31[%c8_193, %c0_194], %227 {strides = array<i32>} : memref<72x128xf32, #tpu.memory_space<vmem>>, vector<8x128xf32>,
    %c7_i32_195 = arith.constant 7 : i32
    %229 = tpu.dynamic_rotate %221 by %c7_i32_195 dim 1 : vector<8x128xf32>, i32 -> vector<8x128xf32>
    %230 = arith.mulf %229, %13 : vector<8x128xf32>
    %c16_196 = arith.constant 16 : index
    %c0_197 = arith.constant 0 : index
    %231 = vector.load %arg31[%c16_196, %c0_197] : memref<72x128xf32, #tpu.memory_space<vmem>>, vector<8x128xf32>
    tpu.vector_store %arg31[%c16_196, %c0_197], %230 {strides = array<i32>} : memref<72x128xf32, #tpu.memory_space<vmem>>, vector<8x128xf32>,
    %c1_i32_198 = arith.constant 1 : i32
    %232 = tpu.dynamic_rotate %221 by %c1_i32_198 dim 1 : vector<8x128xf32>, i32 -> vector<8x128xf32>
    %233 = arith.mulf %232, %16 : vector<8x128xf32>
    %c24_199 = arith.constant 24 : index
    %c0_200 = arith.constant 0 : index
    %234 = vector.load %arg31[%c24_199, %c0_200] : memref<72x128xf32, #tpu.memory_space<vmem>>, vector<8x128xf32>
    tpu.vector_store %arg31[%c24_199, %c0_200], %233 {strides = array<i32>} : memref<72x128xf32, #tpu.memory_space<vmem>>, vector<8x128xf32>,
    %c127_i32_201 = arith.constant 127 : i32
    %235 = tpu.dynamic_rotate %221 by %c127_i32_201 dim 1 : vector<8x128xf32>, i32 -> vector<8x128xf32>
    %236 = arith.mulf %235, %19 : vector<8x128xf32>
    %c40_202 = arith.constant 40 : index
    %c0_203 = arith.constant 0 : index
    %237 = vector.load %arg31[%c40_202, %c0_203] : memref<72x128xf32, #tpu.memory_space<vmem>>, vector<8x128xf32>
    tpu.vector_store %arg31[%c40_202, %c0_203], %236 {strides = array<i32>} : memref<72x128xf32, #tpu.memory_space<vmem>>, vector<8x128xf32>,
    %c121_i32_204 = arith.constant 121 : i32
    %238 = tpu.dynamic_rotate %221 by %c121_i32_204 dim 1 : vector<8x128xf32>, i32 -> vector<8x128xf32>
    %239 = arith.mulf %238, %22 : vector<8x128xf32>
    %c48_205 = arith.constant 48 : index
    %c0_206 = arith.constant 0 : index
    %240 = vector.load %arg31[%c48_205, %c0_206] : memref<72x128xf32, #tpu.memory_space<vmem>>, vector<8x128xf32>
    tpu.vector_store %arg31[%c48_205, %c0_206], %239 {strides = array<i32>} : memref<72x128xf32, #tpu.memory_space<vmem>>, vector<8x128xf32>,
    %c120_i32_207 = arith.constant 120 : i32
    %241 = tpu.dynamic_rotate %221 by %c120_i32_207 dim 1 : vector<8x128xf32>, i32 -> vector<8x128xf32>
    %242 = arith.mulf %241, %25 : vector<8x128xf32>
    %c56_208 = arith.constant 56 : index
    %c0_209 = arith.constant 0 : index
    %243 = vector.load %arg31[%c56_208, %c0_209] : memref<72x128xf32, #tpu.memory_space<vmem>>, vector<8x128xf32>
    tpu.vector_store %arg31[%c56_208, %c0_209], %242 {strides = array<i32>} : memref<72x128xf32, #tpu.memory_space<vmem>>, vector<8x128xf32>,
    %c119_i32_210 = arith.constant 119 : i32
    %244 = tpu.dynamic_rotate %221 by %c119_i32_210 dim 1 : vector<8x128xf32>, i32 -> vector<8x128xf32>
    %245 = arith.mulf %244, %28 : vector<8x128xf32>
    %c64_211 = arith.constant 64 : index
    %c0_212 = arith.constant 0 : index
    %246 = vector.load %arg31[%c64_211, %c0_212] : memref<72x128xf32, #tpu.memory_space<vmem>>, vector<8x128xf32>
    tpu.vector_store %arg31[%c64_211, %c0_212], %245 {strides = array<i32>} : memref<72x128xf32, #tpu.memory_space<vmem>>, vector<8x128xf32>,
    %c0_213 = arith.constant 0 : index
    %c0_214 = arith.constant 0 : index
    %247 = vector.load %arg31[%c0_213, %c0_214] : memref<72x128xf32, #tpu.memory_space<vmem>>, vector<72x128xf32>
    %cst_215 = arith.constant dense<0.000000e+00> : vector<8x128xf32>
    %248 = tpu.matmul %181, %247, %cst_215 {dimension_numbers = #tpu.dot_dimension_numbers<[1], [0], [0], [1], [0, 0, 1, 1], [], []>} : vector<8x72xf32>, vector<72x128xf32>, vector<8x128xf32> -> vector<8x128xf32>
    %cst_216 = arith.constant 0.000000e+00 : f32
    %249 = vector.broadcast %cst_216 : f32 to vector<8x128xf32>
    %250 = arith.maximumf %248, %249 : vector<8x128xf32>
    %251 = vector.extract_strided_slice %186 {offsets = [8, 0], sizes = [8, 128], strides = [1, 1]} : vector<16x128xf32> to vector<8x128xf32>
    %252 = arith.addf %251, %250 : vector<8x128xf32>
    %253 = arith.subf %3, %252 : vector<8x128xf32>
    %c0_217 = arith.constant 0 : index
    %c0_218 = arith.constant 0 : index
    %254 = vector.load %arg21[%c0_217, %c0_218] : memref<16x8xf32, #tpu.memory_space<vmem>>, vector<16x8xf32>
    %c0_219 = arith.constant 0 : index
    %c0_220 = arith.constant 0 : index
    %255 = vector.load %arg22[%c0_219, %c0_220] : memref<16x8xf32, #tpu.memory_space<vmem>>, vector<16x8xf32>
    %c0_221 = arith.constant 0 : index
    %c0_222 = arith.constant 0 : index
    %256 = vector.load %arg23[%c0_221, %c0_222] : memref<16x8xf32, #tpu.memory_space<vmem>>, vector<16x8xf32>
    %c0_223 = arith.constant 0 : index
    %c0_224 = arith.constant 0 : index
    %257 = vector.load %arg24[%c0_223, %c0_224] : memref<8x72xf32, #tpu.memory_space<vmem>>, vector<8x72xf32>
    %c0_225 = arith.constant 0 : index
    %c0_226 = arith.constant 0 : index
    %258 = vector.load %arg25[%c0_225, %c0_226] : memref<8x8xf32, #tpu.memory_space<vmem>>, vector<8x8xf32>
    %c0_227 = arith.constant 0 : index
    %c0_228 = arith.constant 0 : index
    %259 = vector.load %arg26[%c0_227, %c0_228] : memref<8x72xf32, #tpu.memory_space<vmem>>, vector<8x72xf32>
    %cst_229 = arith.constant dense<0.000000e+00> : vector<16x128xf32>
    %260 = tpu.matmul %254, %100, %cst_229 {dimension_numbers = #tpu.dot_dimension_numbers<[1], [0], [0], [1], [0, 0, 1, 1], [], []>} : vector<16x8xf32>, vector<8x128xf32>, vector<16x128xf32> -> vector<16x128xf32>
    %cst_230 = arith.constant dense<0.000000e+00> : vector<16x128xf32>
    %261 = tpu.matmul %255, %175, %cst_230 {dimension_numbers = #tpu.dot_dimension_numbers<[1], [0], [0], [1], [0, 0, 1, 1], [], []>} : vector<16x8xf32>, vector<8x128xf32>, vector<16x128xf32> -> vector<16x128xf32>
    %262 = arith.addf %260, %261 : vector<16x128xf32>
    %cst_231 = arith.constant dense<0.000000e+00> : vector<16x128xf32>
    %263 = tpu.matmul %256, %253, %cst_231 {dimension_numbers = #tpu.dot_dimension_numbers<[1], [0], [0], [1], [0, 0, 1, 1], [], []>} : vector<16x8xf32>, vector<8x128xf32>, vector<16x128xf32> -> vector<16x128xf32>
    %264 = arith.addf %262, %263 : vector<16x128xf32>
    %265 = vector.extract_strided_slice %264 {offsets = [0, 0], sizes = [8, 128], strides = [1, 1]} : vector<16x128xf32> to vector<8x128xf32>
    %cst_232 = arith.constant 0.000000e+00 : f32
    %266 = vector.broadcast %cst_232 : f32 to vector<8x128xf32>
    %267 = arith.maximumf %265, %266 : vector<8x128xf32>
    %c32_233 = arith.constant 32 : index
    %c0_234 = arith.constant 0 : index
    %268 = vector.load %arg31[%c32_233, %c0_234] : memref<72x128xf32, #tpu.memory_space<vmem>>, vector<8x128xf32>
    tpu.vector_store %arg31[%c32_233, %c0_234], %267 {strides = array<i32>} : memref<72x128xf32, #tpu.memory_space<vmem>>, vector<8x128xf32>,
    %c9_i32_235 = arith.constant 9 : i32
    %269 = tpu.dynamic_rotate %267 by %c9_i32_235 dim 1 : vector<8x128xf32>, i32 -> vector<8x128xf32>
    %270 = arith.mulf %269, %7 : vector<8x128xf32>
    %c0_236 = arith.constant 0 : index
    %c0_237 = arith.constant 0 : index
    %271 = vector.load %arg31[%c0_236, %c0_237] : memref<72x128xf32, #tpu.memory_space<vmem>>, vector<8x128xf32>
    tpu.vector_store %arg31[%c0_236, %c0_237], %270 {strides = array<i32>} : memref<72x128xf32, #tpu.memory_space<vmem>>, vector<8x128xf32>,
    %c8_i32_238 = arith.constant 8 : i32
    %272 = tpu.dynamic_rotate %267 by %c8_i32_238 dim 1 : vector<8x128xf32>, i32 -> vector<8x128xf32>
    %273 = arith.mulf %272, %10 : vector<8x128xf32>
    %c8_239 = arith.constant 8 : index
    %c0_240 = arith.constant 0 : index
    %274 = vector.load %arg31[%c8_239, %c0_240] : memref<72x128xf32, #tpu.memory_space<vmem>>, vector<8x128xf32>
    tpu.vector_store %arg31[%c8_239, %c0_240], %273 {strides = array<i32>} : memref<72x128xf32, #tpu.memory_space<vmem>>, vector<8x128xf32>,
    %c7_i32_241 = arith.constant 7 : i32
    %275 = tpu.dynamic_rotate %267 by %c7_i32_241 dim 1 : vector<8x128xf32>, i32 -> vector<8x128xf32>
    %276 = arith.mulf %275, %13 : vector<8x128xf32>
    %c16_242 = arith.constant 16 : index
    %c0_243 = arith.constant 0 : index
    %277 = vector.load %arg31[%c16_242, %c0_243] : memref<72x128xf32, #tpu.memory_space<vmem>>, vector<8x128xf32>
    tpu.vector_store %arg31[%c16_242, %c0_243], %276 {strides = array<i32>} : memref<72x128xf32, #tpu.memory_space<vmem>>, vector<8x128xf32>,
    %c1_i32_244 = arith.constant 1 : i32
    %278 = tpu.dynamic_rotate %267 by %c1_i32_244 dim 1 : vector<8x128xf32>, i32 -> vector<8x128xf32>
    %279 = arith.mulf %278, %16 : vector<8x128xf32>
    %c24_245 = arith.constant 24 : index
    %c0_246 = arith.constant 0 : index
    %280 = vector.load %arg31[%c24_245, %c0_246] : memref<72x128xf32, #tpu.memory_space<vmem>>, vector<8x128xf32>
    tpu.vector_store %arg31[%c24_245, %c0_246], %279 {strides = array<i32>} : memref<72x128xf32, #tpu.memory_space<vmem>>, vector<8x128xf32>,
    %c127_i32_247 = arith.constant 127 : i32
    %281 = tpu.dynamic_rotate %267 by %c127_i32_247 dim 1 : vector<8x128xf32>, i32 -> vector<8x128xf32>
    %282 = arith.mulf %281, %19 : vector<8x128xf32>
    %c40_248 = arith.constant 40 : index
    %c0_249 = arith.constant 0 : index
    %283 = vector.load %arg31[%c40_248, %c0_249] : memref<72x128xf32, #tpu.memory_space<vmem>>, vector<8x128xf32>
    tpu.vector_store %arg31[%c40_248, %c0_249], %282 {strides = array<i32>} : memref<72x128xf32, #tpu.memory_space<vmem>>, vector<8x128xf32>,
    %c121_i32_250 = arith.constant 121 : i32
    %284 = tpu.dynamic_rotate %267 by %c121_i32_250 dim 1 : vector<8x128xf32>, i32 -> vector<8x128xf32>
    %285 = arith.mulf %284, %22 : vector<8x128xf32>
    %c48_251 = arith.constant 48 : index
    %c0_252 = arith.constant 0 : index
    %286 = vector.load %arg31[%c48_251, %c0_252] : memref<72x128xf32, #tpu.memory_space<vmem>>, vector<8x128xf32>
    tpu.vector_store %arg31[%c48_251, %c0_252], %285 {strides = array<i32>} : memref<72x128xf32, #tpu.memory_space<vmem>>, vector<8x128xf32>,
    %c120_i32_253 = arith.constant 120 : i32
    %287 = tpu.dynamic_rotate %267 by %c120_i32_253 dim 1 : vector<8x128xf32>, i32 -> vector<8x128xf32>
    %288 = arith.mulf %287, %25 : vector<8x128xf32>
    %c56_254 = arith.constant 56 : index
    %c0_255 = arith.constant 0 : index
    %289 = vector.load %arg31[%c56_254, %c0_255] : memref<72x128xf32, #tpu.memory_space<vmem>>, vector<8x128xf32>
    tpu.vector_store %arg31[%c56_254, %c0_255], %288 {strides = array<i32>} : memref<72x128xf32, #tpu.memory_space<vmem>>, vector<8x128xf32>,
    %c119_i32_256 = arith.constant 119 : i32
    %290 = tpu.dynamic_rotate %267 by %c119_i32_256 dim 1 : vector<8x128xf32>, i32 -> vector<8x128xf32>
    %291 = arith.mulf %290, %28 : vector<8x128xf32>
    %c64_257 = arith.constant 64 : index
    %c0_258 = arith.constant 0 : index
    %292 = vector.load %arg31[%c64_257, %c0_258] : memref<72x128xf32, #tpu.memory_space<vmem>>, vector<8x128xf32>
    tpu.vector_store %arg31[%c64_257, %c0_258], %291 {strides = array<i32>} : memref<72x128xf32, #tpu.memory_space<vmem>>, vector<8x128xf32>,
    %c0_259 = arith.constant 0 : index
    %c0_260 = arith.constant 0 : index
    %293 = vector.load %arg31[%c0_259, %c0_260] : memref<72x128xf32, #tpu.memory_space<vmem>>, vector<72x128xf32>
    %cst_261 = arith.constant dense<0.000000e+00> : vector<8x128xf32>
    %294 = tpu.matmul %257, %293, %cst_261 {dimension_numbers = #tpu.dot_dimension_numbers<[1], [0], [0], [1], [0, 0, 1, 1], [], []>} : vector<8x72xf32>, vector<72x128xf32>, vector<8x128xf32> -> vector<8x128xf32>
    %cst_262 = arith.constant 0.000000e+00 : f32
    %295 = vector.broadcast %cst_262 : f32 to vector<8x128xf32>
    %296 = arith.maximumf %294, %295 : vector<8x128xf32>
    %cst_263 = arith.constant dense<0.000000e+00> : vector<8x128xf32>
    %297 = tpu.matmul %258, %296, %cst_263 {dimension_numbers = #tpu.dot_dimension_numbers<[1], [0], [0], [1], [0, 0, 1, 1], [], []>} : vector<8x8xf32>, vector<8x128xf32>, vector<8x128xf32> -> vector<8x128xf32>
    %cst_264 = arith.constant 0.000000e+00 : f32
    %298 = vector.broadcast %cst_264 : f32 to vector<8x128xf32>
    %299 = arith.maximumf %297, %298 : vector<8x128xf32>
    %c32_265 = arith.constant 32 : index
    %c0_266 = arith.constant 0 : index
    %300 = vector.load %arg31[%c32_265, %c0_266] : memref<72x128xf32, #tpu.memory_space<vmem>>, vector<8x128xf32>
    tpu.vector_store %arg31[%c32_265, %c0_266], %299 {strides = array<i32>} : memref<72x128xf32, #tpu.memory_space<vmem>>, vector<8x128xf32>,
    %c9_i32_267 = arith.constant 9 : i32
    %301 = tpu.dynamic_rotate %299 by %c9_i32_267 dim 1 : vector<8x128xf32>, i32 -> vector<8x128xf32>
    %302 = arith.mulf %301, %7 : vector<8x128xf32>
    %c0_268 = arith.constant 0 : index
    %c0_269 = arith.constant 0 : index
    %303 = vector.load %arg31[%c0_268, %c0_269] : memref<72x128xf32, #tpu.memory_space<vmem>>, vector<8x128xf32>
    tpu.vector_store %arg31[%c0_268, %c0_269], %302 {strides = array<i32>} : memref<72x128xf32, #tpu.memory_space<vmem>>, vector<8x128xf32>,
    %c8_i32_270 = arith.constant 8 : i32
    %304 = tpu.dynamic_rotate %299 by %c8_i32_270 dim 1 : vector<8x128xf32>, i32 -> vector<8x128xf32>
    %305 = arith.mulf %304, %10 : vector<8x128xf32>
    %c8_271 = arith.constant 8 : index
    %c0_272 = arith.constant 0 : index
    %306 = vector.load %arg31[%c8_271, %c0_272] : memref<72x128xf32, #tpu.memory_space<vmem>>, vector<8x128xf32>
    tpu.vector_store %arg31[%c8_271, %c0_272], %305 {strides = array<i32>} : memref<72x128xf32, #tpu.memory_space<vmem>>, vector<8x128xf32>,
    %c7_i32_273 = arith.constant 7 : i32
    %307 = tpu.dynamic_rotate %299 by %c7_i32_273 dim 1 : vector<8x128xf32>, i32 -> vector<8x128xf32>
    %308 = arith.mulf %307, %13 : vector<8x128xf32>
    %c16_274 = arith.constant 16 : index
    %c0_275 = arith.constant 0 : index
    %309 = vector.load %arg31[%c16_274, %c0_275] : memref<72x128xf32, #tpu.memory_space<vmem>>, vector<8x128xf32>
    tpu.vector_store %arg31[%c16_274, %c0_275], %308 {strides = array<i32>} : memref<72x128xf32, #tpu.memory_space<vmem>>, vector<8x128xf32>,
    %c1_i32_276 = arith.constant 1 : i32
    %310 = tpu.dynamic_rotate %299 by %c1_i32_276 dim 1 : vector<8x128xf32>, i32 -> vector<8x128xf32>
    %311 = arith.mulf %310, %16 : vector<8x128xf32>
    %c24_277 = arith.constant 24 : index
    %c0_278 = arith.constant 0 : index
    %312 = vector.load %arg31[%c24_277, %c0_278] : memref<72x128xf32, #tpu.memory_space<vmem>>, vector<8x128xf32>
    tpu.vector_store %arg31[%c24_277, %c0_278], %311 {strides = array<i32>} : memref<72x128xf32, #tpu.memory_space<vmem>>, vector<8x128xf32>,
    %c127_i32_279 = arith.constant 127 : i32
    %313 = tpu.dynamic_rotate %299 by %c127_i32_279 dim 1 : vector<8x128xf32>, i32 -> vector<8x128xf32>
    %314 = arith.mulf %313, %19 : vector<8x128xf32>
    %c40_280 = arith.constant 40 : index
    %c0_281 = arith.constant 0 : index
    %315 = vector.load %arg31[%c40_280, %c0_281] : memref<72x128xf32, #tpu.memory_space<vmem>>, vector<8x128xf32>
    tpu.vector_store %arg31[%c40_280, %c0_281], %314 {strides = array<i32>} : memref<72x128xf32, #tpu.memory_space<vmem>>, vector<8x128xf32>,
    %c121_i32_282 = arith.constant 121 : i32
    %316 = tpu.dynamic_rotate %299 by %c121_i32_282 dim 1 : vector<8x128xf32>, i32 -> vector<8x128xf32>
    %317 = arith.mulf %316, %22 : vector<8x128xf32>
    %c48_283 = arith.constant 48 : index
    %c0_284 = arith.constant 0 : index
    %318 = vector.load %arg31[%c48_283, %c0_284] : memref<72x128xf32, #tpu.memory_space<vmem>>, vector<8x128xf32>
    tpu.vector_store %arg31[%c48_283, %c0_284], %317 {strides = array<i32>} : memref<72x128xf32, #tpu.memory_space<vmem>>, vector<8x128xf32>,
    %c120_i32_285 = arith.constant 120 : i32
    %319 = tpu.dynamic_rotate %299 by %c120_i32_285 dim 1 : vector<8x128xf32>, i32 -> vector<8x128xf32>
    %320 = arith.mulf %319, %25 : vector<8x128xf32>
    %c56_286 = arith.constant 56 : index
    %c0_287 = arith.constant 0 : index
    %321 = vector.load %arg31[%c56_286, %c0_287] : memref<72x128xf32, #tpu.memory_space<vmem>>, vector<8x128xf32>
    tpu.vector_store %arg31[%c56_286, %c0_287], %320 {strides = array<i32>} : memref<72x128xf32, #tpu.memory_space<vmem>>, vector<8x128xf32>,
    %c119_i32_288 = arith.constant 119 : i32
    %322 = tpu.dynamic_rotate %299 by %c119_i32_288 dim 1 : vector<8x128xf32>, i32 -> vector<8x128xf32>
    %323 = arith.mulf %322, %28 : vector<8x128xf32>
    %c64_289 = arith.constant 64 : index
    %c0_290 = arith.constant 0 : index
    %324 = vector.load %arg31[%c64_289, %c0_290] : memref<72x128xf32, #tpu.memory_space<vmem>>, vector<8x128xf32>
    tpu.vector_store %arg31[%c64_289, %c0_290], %323 {strides = array<i32>} : memref<72x128xf32, #tpu.memory_space<vmem>>, vector<8x128xf32>,
    %c0_291 = arith.constant 0 : index
    %c0_292 = arith.constant 0 : index
    %325 = vector.load %arg31[%c0_291, %c0_292] : memref<72x128xf32, #tpu.memory_space<vmem>>, vector<72x128xf32>
    %cst_293 = arith.constant dense<0.000000e+00> : vector<8x128xf32>
    %326 = tpu.matmul %259, %325, %cst_293 {dimension_numbers = #tpu.dot_dimension_numbers<[1], [0], [0], [1], [0, 0, 1, 1], [], []>} : vector<8x72xf32>, vector<72x128xf32>, vector<8x128xf32> -> vector<8x128xf32>
    %cst_294 = arith.constant 0.000000e+00 : f32
    %327 = vector.broadcast %cst_294 : f32 to vector<8x128xf32>
    %328 = arith.maximumf %326, %327 : vector<8x128xf32>
    %329 = vector.extract_strided_slice %264 {offsets = [8, 0], sizes = [8, 128], strides = [1, 1]} : vector<16x128xf32> to vector<8x128xf32>
    %330 = arith.addf %329, %328 : vector<8x128xf32>
    %331 = arith.addf %0, %330 : vector<8x128xf32>
    %c0_295 = arith.constant 0 : index
    %c0_296 = arith.constant 0 : index
    %332 = vector.load %arg27[%c0_295, %c0_296] : memref<8x128xf32, #tpu.memory_space<vmem>>, vector<8x128xf32>
    tpu.vector_store %arg27[%c0_295, %c0_296], %331 {strides = array<i32>} : memref<8x128xf32, #tpu.memory_space<vmem>>, vector<8x128xf32>,
    %c0_297 = arith.constant 0 : index
    %c0_298 = arith.constant 0 : index
    %333 = vector.load %arg28[%c0_297, %c0_298] : memref<8x128xf32, #tpu.memory_space<vmem>>, vector<8x128xf32>
    tpu.vector_store %arg28[%c0_297, %c0_298], %100 {strides = array<i32>} : memref<8x128xf32, #tpu.memory_space<vmem>>, vector<8x128xf32>,
    %c0_299 = arith.constant 0 : index
    %c0_300 = arith.constant 0 : index
    %334 = vector.load %arg29[%c0_299, %c0_300] : memref<8x128xf32, #tpu.memory_space<vmem>>, vector<8x128xf32>
    tpu.vector_store %arg29[%c0_299, %c0_300], %175 {strides = array<i32>} : memref<8x128xf32, #tpu.memory_space<vmem>>, vector<8x128xf32>,
    %c0_301 = arith.constant 0 : index
    %c0_302 = arith.constant 0 : index
    %335 = vector.load %arg30[%c0_301, %c0_302] : memref<8x128xf32, #tpu.memory_space<vmem>>, vector<8x128xf32>
    tpu.vector_store %arg30[%c0_301, %c0_302], %253 {strides = array<i32>} : memref<8x128xf32, #tpu.memory_space<vmem>>, vector<8x128xf32>,
    return
  }
  func.func @transform_0(%arg0: i32) -> (i32, i32) {
    %c0_i32 = arith.constant 0 : i32
    %c0_i32_0 = arith.constant 0 : i32
    return %c0_i32, %arg0 : i32, i32
  }
  func.func @transform_1(%arg0: i32) -> (i32, i32) {
    %c0_i32 = arith.constant 0 : i32
    %c0_i32_0 = arith.constant 0 : i32
    return %c0_i32, %arg0 : i32, i32
  }
  func.func @transform_2(%arg0: i32) -> (i32, i32) {
    %c0_i32 = arith.constant 0 : i32
    %c0_i32_0 = arith.constant 0 : i32
    return %c0_i32, %arg0 : i32, i32
  }
  func.func @transform_3(%arg0: i32) -> (i32, i32) {
    %c0_i32 = arith.constant 0 : i32
    %c0_i32_0 = arith.constant 0 : i32
    return %c0_i32, %arg0 : i32, i32
  }
  func.func @transform_4(%arg0: i32) -> (i32, i32) {
    %c0_i32 = arith.constant 0 : i32
    %c0_i32_0 = arith.constant 0 : i32
    %c0_i32_1 = arith.constant 0 : i32
    return %c0_i32, %c0_i32_0 : i32, i32
  }
  func.func @transform_5(%arg0: i32) -> (i32, i32) {
    %c0_i32 = arith.constant 0 : i32
    %c0_i32_0 = arith.constant 0 : i32
    %c0_i32_1 = arith.constant 0 : i32
    return %c0_i32, %c0_i32_0 : i32, i32
  }
  func.func @transform_6(%arg0: i32) -> (i32, i32) {
    %c0_i32 = arith.constant 0 : i32
    %c0_i32_0 = arith.constant 0 : i32
    %c0_i32_1 = arith.constant 0 : i32
    return %c0_i32, %c0_i32_0 : i32, i32
  }
  func.func @transform_7(%arg0: i32) -> (i32, i32) {
    %c0_i32 = arith.constant 0 : i32
    %c0_i32_0 = arith.constant 0 : i32
    %c0_i32_1 = arith.constant 0 : i32
    return %c0_i32, %c0_i32_0 : i32, i32
  }
  func.func @transform_8(%arg0: i32) -> (i32, i32) {
    %c0_i32 = arith.constant 0 : i32
    %c0_i32_0 = arith.constant 0 : i32
    %c0_i32_1 = arith.constant 0 : i32
    return %c0_i32, %c0_i32_0 : i32, i32
  }
  func.func @transform_9(%arg0: i32) -> (i32, i32) {
    %c0_i32 = arith.constant 0 : i32
    %c0_i32_0 = arith.constant 0 : i32
    %c0_i32_1 = arith.constant 0 : i32
    return %c0_i32, %c0_i32_0 : i32, i32
  }
  func.func @transform_10(%arg0: i32) -> (i32, i32) {
    %c0_i32 = arith.constant 0 : i32
    %c0_i32_0 = arith.constant 0 : i32
    %c0_i32_1 = arith.constant 0 : i32
    return %c0_i32, %c0_i32_0 : i32, i32
  }
  func.func @transform_11(%arg0: i32) -> (i32, i32) {
    %c0_i32 = arith.constant 0 : i32
    %c0_i32_0 = arith.constant 0 : i32
    %c0_i32_1 = arith.constant 0 : i32
    return %c0_i32, %c0_i32_0 : i32, i32
  }
  func.func @transform_12(%arg0: i32) -> (i32, i32) {
    %c0_i32 = arith.constant 0 : i32
    %c0_i32_0 = arith.constant 0 : i32
    %c0_i32_1 = arith.constant 0 : i32
    return %c0_i32, %c0_i32_0 : i32, i32
  }
  func.func @transform_13(%arg0: i32) -> (i32, i32) {
    %c0_i32 = arith.constant 0 : i32
    %c0_i32_0 = arith.constant 0 : i32
    %c0_i32_1 = arith.constant 0 : i32
    return %c0_i32, %c0_i32_0 : i32, i32
  }
  func.func @transform_14(%arg0: i32) -> (i32, i32) {
    %c0_i32 = arith.constant 0 : i32
    %c0_i32_0 = arith.constant 0 : i32
    %c0_i32_1 = arith.constant 0 : i32
    return %c0_i32, %c0_i32_0 : i32, i32
  }
  func.func @transform_15(%arg0: i32) -> (i32, i32) {
    %c0_i32 = arith.constant 0 : i32
    %c0_i32_0 = arith.constant 0 : i32
    %c0_i32_1 = arith.constant 0 : i32
    return %c0_i32, %c0_i32_0 : i32, i32
  }
  func.func @transform_16(%arg0: i32) -> (i32, i32) {
    %c0_i32 = arith.constant 0 : i32
    %c0_i32_0 = arith.constant 0 : i32
    %c0_i32_1 = arith.constant 0 : i32
    return %c0_i32, %c0_i32_0 : i32, i32
  }
  func.func @transform_17(%arg0: i32) -> (i32, i32) {
    %c0_i32 = arith.constant 0 : i32
    %c0_i32_0 = arith.constant 0 : i32
    %c0_i32_1 = arith.constant 0 : i32
    return %c0_i32, %c0_i32_0 : i32, i32
  }
  func.func @transform_18(%arg0: i32) -> (i32, i32) {
    %c0_i32 = arith.constant 0 : i32
    %c0_i32_0 = arith.constant 0 : i32
    %c0_i32_1 = arith.constant 0 : i32
    return %c0_i32, %c0_i32_0 : i32, i32
  }
  func.func @transform_19(%arg0: i32) -> (i32, i32) {
    %c0_i32 = arith.constant 0 : i32
    %c0_i32_0 = arith.constant 0 : i32
    %c0_i32_1 = arith.constant 0 : i32
    return %c0_i32, %c0_i32_0 : i32, i32
  }
  func.func @transform_20(%arg0: i32) -> (i32, i32) {
    %c0_i32 = arith.constant 0 : i32
    %c0_i32_0 = arith.constant 0 : i32
    %c0_i32_1 = arith.constant 0 : i32
    return %c0_i32, %c0_i32_0 : i32, i32
  }
  func.func @transform_21(%arg0: i32) -> (i32, i32) {
    %c0_i32 = arith.constant 0 : i32
    %c0_i32_0 = arith.constant 0 : i32
    %c0_i32_1 = arith.constant 0 : i32
    return %c0_i32, %c0_i32_0 : i32, i32
  }
  func.func @transform_22(%arg0: i32) -> (i32, i32) {
    %c0_i32 = arith.constant 0 : i32
    %c0_i32_0 = arith.constant 0 : i32
    %c0_i32_1 = arith.constant 0 : i32
    return %c0_i32, %c0_i32_0 : i32, i32
  }
  func.func @transform_23(%arg0: i32) -> (i32, i32) {
    %c0_i32 = arith.constant 0 : i32
    %c0_i32_0 = arith.constant 0 : i32
    %c0_i32_1 = arith.constant 0 : i32
    return %c0_i32, %c0_i32_0 : i32, i32
  }
  func.func @transform_24(%arg0: i32) -> (i32, i32) {
    %c0_i32 = arith.constant 0 : i32
    %c0_i32_0 = arith.constant 0 : i32
    %c0_i32_1 = arith.constant 0 : i32
    return %c0_i32, %c0_i32_0 : i32, i32
  }
  func.func @transform_25(%arg0: i32) -> (i32, i32) {
    %c0_i32 = arith.constant 0 : i32
    %c0_i32_0 = arith.constant 0 : i32
    %c0_i32_1 = arith.constant 0 : i32
    return %c0_i32, %c0_i32_0 : i32, i32
  }
  func.func @transform_26(%arg0: i32) -> (i32, i32) {
    %c0_i32 = arith.constant 0 : i32
    %c0_i32_0 = arith.constant 0 : i32
    return %c0_i32, %arg0 : i32, i32
  }
  func.func @transform_27(%arg0: i32) -> (i32, i32) {
    %c0_i32 = arith.constant 0 : i32
    %c0_i32_0 = arith.constant 0 : i32
    return %c0_i32, %arg0 : i32, i32
  }
  func.func @transform_28(%arg0: i32) -> (i32, i32) {
    %c0_i32 = arith.constant 0 : i32
    %c0_i32_0 = arith.constant 0 : i32
    return %c0_i32, %arg0 : i32, i32
  }
  func.func @transform_29(%arg0: i32) -> (i32, i32) {
    %c0_i32 = arith.constant 0 : i32
    %c0_i32_0 = arith.constant 0 : i32
    return %c0_i32, %arg0 : i32, i32
  }
}

</mosaic_0001>

<bundles_post_ra>
// kernel: tpu_custom_call.1
= control target key start
LH: loop header
LB: loop body
LE: loop exit
PB: predicated region body
PF: predicated region fallthrough
CT: control target
= control target key end

     0   :  { %s2871_s6 = smov 1   ;;  %s2872_s10 = smov 2   ;;  %s3413_s0 = inlined_call_operand.smem [shape: u32[30], index: -1, kind: input, shape index: {}] }
   0x1   :  { %s2923_s5 = sld [smem:[%s3413_s0]]   ;;  %s2873_s14 = smov 3  }
   0x2   :  { %s2928_s9 = sld [smem:[%s3413_s0 + %s2871_s6]]   ;;  %s2874_s18 = smov 4  }
   0x3   :  { %s2933_s13 = sld [smem:[%s3413_s0 + %s2872_s10]]   ;;  %s2875_s22 = smov 5  }
   0x4   :  { %s2938_s17 = sld [smem:[%s3413_s0 + %s2873_s14]]   ;;  %s2876_s26 = smov 6  }
   0x5   :  { %s2943_s21 = sld [smem:[%s3413_s0 + %s2874_s18]]   ;;  %s2877_s30 = smov 7  }
   0x6   :  { %s2948_s25 = sld [smem:[%s3413_s0 + %s2875_s22]]   ;;  %s2878_s4 = smov 8  }
   0x7   :  { %s2953_s29 = sld [smem:[%s3413_s0 + %s2876_s26]]   ;;  %s2879_s10 = smov 9  }
   0x8   :  { %s2958_s3 = sld [smem:[%s3413_s0 + %s2877_s30]]   ;;  %s2880_s15 = smov 10  }
   0x9   :  { %s2963_s8 = sld [smem:[%s3413_s0 + %s2878_s4]]   ;;  %s2881_s20 = smov 11  }
   0xa   :  { %3417 = sst [smem:[#allocation13_spill]] %s2938_s17  ;;  %s2882_s26 = smov 12  }
   0xb   :  { %s2968_s14 = sld [smem:[%s3413_s0 + %s2879_s10]]   ;;  %s2883_s1 = smov 13  }
   0xc   :  { %s2973_s19 = sld [smem:[%s3413_s0 + %s2880_s15]]   ;;  %s2884_s7 = smov 14  }
   0xd   :  { %s2978_s24 = sld [smem:[%s3413_s0 + %s2881_s20]]   ;;  %s2885_s15 = smov 15  }
   0xe   :  { %s2983_s30 = sld [smem:[%s3413_s0 + %s2882_s26]]   ;;  %s2886_s22 = smov 16  }
   0xf   :  { %s2988_s6 = sld [smem:[%s3413_s0 + %s2883_s1]]   ;;  %s2887_s28 = smov 17  }
  0x10   :  { %s2993_s12 = sld [smem:[%s3413_s0 + %s2884_s7]]   ;;  %s2888_s7 = smov 18  }
  0x11   :  { %s2998_s20 = sld [smem:[%s3413_s0 + %s2885_s15]]   ;;  %s2889_s15 = smov 19  }
  0x12   :  { %s3003_s27 = sld [smem:[%s3413_s0 + %s2886_s22]]   ;;  %s2890_s22 = smov 20  }
  0x13   :  { %s3008_s4 = sld [smem:[%s3413_s0 + %s2887_s28]]   ;;  %s2891_s28 = smov 21  }
  0x14   :  { %3418 = sst [smem:[#allocation14_spill]] %s2983_s30 }
  0x15   :  { %3419 = sst [smem:[#allocation15_spill]] %s2988_s6 }
  0x16   :  { %s3013_s17 = sld [smem:[%s3413_s0 + %s2888_s7]]   ;;  %s2892_s7 = smov 22  }
  0x17   :  { %s3018_s6 = sld [smem:[%s3413_s0 + %s2889_s15]]   ;;  %s2893_s15 = smov 23  }
  0x18   :  { %s3023_s30 = sld [smem:[%s3413_s0 + %s2890_s22]]   ;;  %s2894_s22 = smov 24  }
  0x19   :  { %3420 = sst [smem:[#allocation16_spill]] %s3008_s4 }
  0x1a   :  { %s3028_s4 = sld [smem:[%s3413_s0 + %s2891_s28]]   ;;  %s2895_s28 = smov 25  }
  0x1c   :  { %3421 = sst [smem:[#allocation17_spill]] %s3013_s17 }
  0x1d   :  { %3422 = sst [smem:[#allocation18_spill]] %s3018_s6 }
  0x1e   :  { %3423 = sst [smem:[#allocation19_spill]] %s3023_s30 }
  0x1f   :  { %s3033_s17 = sld [smem:[%s3413_s0 + %s2892_s7]]   ;;  %s2896_s7 = smov 26  }
  0x20   :  { %3424 = sst [smem:[#allocation20_spill]] %s3028_s4 }
  0x21   :  { %s3038_s6 = sld [smem:[%s3413_s0 + %s2893_s15]]   ;;  %s2897_s15 = smov 27  }
  0x22   :  { %s3043_s30 = sld [smem:[%s3413_s0 + %s2894_s22]]   ;;  %s2898_s22 = smov 28  }
  0x23   :  { %s3048_s4 = sld [smem:[%s3413_s0 + %s2895_s28]]   ;;  %s2899_s28 = smov 29  }
  0x25   :  { %3425 = sst [smem:[#allocation21_spill]] %s3033_s17 }
  0x26   :  { %s3053_s17 = sld [smem:[%s3413_s0 + %s2896_s7]]  }
  0x27   :  { %3426 = sst [smem:[#allocation22_spill]] %s3038_s6 }
  0x28   :  { %3427 = sst [smem:[#allocation23_spill]] %s3043_s30 }
  0x29   :  { %3428 = sst [smem:[#allocation24_spill]] %s3048_s4 }
  0x2a   :  { %s3058_s6 = sld [smem:[%s3413_s0 + %s2897_s15]]  }
  0x2b   :  { %s3063_s30 = sld [smem:[%s3413_s0 + %s2898_s22]]  }
  0x2c   :  { %s3068_s4 = sld [smem:[%s3413_s0 + %s2899_s28]]  }
  0x2d   :  { %65 = vsyncpa [#allocation4], 0 }
  0x2e   :  { %66 = vsyncpa [#allocation6], 0  ;;  %v3071_v0 = vld [vmem:[%s2923_s5] sm:$0xff]  ;;  %vm163_vm0 = vcmask 64512   ;;  %v159_v2 = vld [vmem:[%s2948_s25 + $0x8] sm:$0xff] }
  0x2f   :  { %v158_v1 = vld [vmem:[%s2948_s25] sm:$0xff]  ;;  %2393 = vmatprep.subr.mxu0 %v3071_v0 }
  0x30   :  { %2395 = vmatprep.mubr.msk.f32.mxu0 %vm163_vm0, %v158_v1 }
  0x31   :  { %67 = vsyncpa [#allocation9], 0  ;;  %2394 = vmatpush3.msra.mxu0 %v3071_v0  ;;  %v2900_v3 = vmov 0.0|0.0   ;;  %s2901_s0 = smov 7   ;;  %s2902_s25 = smov 9   ;;  %v2907_v7 = vmov 0.0   ;;  %v126_v8 = vlaneseq }
  0x32   :  { %2396 = vmatmul.mubr.msk.f32.vlgmr.msra.gmra.mrb[0].mxu0 %vm163_vm0, %v159_v2  ;;  %2626 = vmatprep.subr.bf16.mxu1 %v2900_v3  ;;  %s2903_s7 = smov 1   ;;  %s2904_s10 = smov 8   ;;  %vm2908_vm1 = vmmov 0   ;;  %v124_v12 = vld [vmem:[%s2943_s21] sm:$0xff]  ;;  %v3121_v43 = vld [vmem:[%s2943_s21 + $0x8] ss:$0 sm:$0xff] }
  0x33   :  { %s2905_s11 = smov 121   ;;  %s2906_s15 = smov 127   ;;  %2419 = vmatprep.subr.mxu0 %v2907_v7  ;;  %2416 = vmatprep.mubr.msk.f32.mxu1 %vm2908_vm1, %v2907_v7  ;;  %v127_v9 = vshrl.u32 %v126_v8, 7  ;;  %v160_v46 = vld [vmem:[%s2953_s29] sm:$0xff]  ;;  %vm288_vm2 = vcmask 588800   ;;  %v556_v55 = vld [vmem:[%s2968_s14 + $0x8] sm:$0xff] }
  0x34   :  { %2421 = vmatprep.mubr.msk.f32.mxu0 %vm2908_vm1, %v2907_v7  ;;  %s2909_s16 = smov 119   ;;  %s2910_s18 = smov 120   ;;  %v161_v50 = vld [vmem:[%s2958_s3] sm:$0xff] }
  0x35   :  { %v128_v10 = vsub.s32 0, %v127_v9  ;;  %v132_v11 = vsub.s32 1, %v127_v9  ;;  %v140_v13 = vsub.s32 3, %v127_v9  ;;  %v136_v16 = vsub.s32 2, %v127_v9  ;;  %v555_v54 = vld [vmem:[%s2968_s14] sm:$0xff]  ;;  %s3431_s21 = sld [smem:[#allocation16_spill]] }
  0x36   :  { %v144_v20 = vsub.s32 5, %v127_v9  ;;  %v152_v29 = vsub.s32 7, %v127_v9  ;;  %v148_v32 = vsub.s32 6, %v127_v9  ;;  %s3432_s29 = sld [smem:[#allocation20_spill]]  ;;  %s3433_s3 = sld [smem:[#allocation17_spill]] }
  0x37   :  { %v3096_v17 = vrot.slane %v124_v12, %v128_v10  ;;  %v3098_v18 = vrot.slane %v124_v12, %v132_v11  ;;  %v3100_v19 = vrot.slane %v124_v12, %v140_v13  ;;  %v3102_v23 = vrot.slane %v124_v12, %v136_v16  ;;  %v162_v16 = vld [vmem:[%s2963_s8] sm:$0xff]  ;;  %s3434_s8 = sld [smem:[#allocation18_spill]]  ;;  %s3435_s14 = sld [smem:[#allocation19_spill]] }
  0x38   :  { %v3107_v27 = vrot.slane %v124_v12, %v144_v20  ;;  %v3112_v35 = vrot.slane %v124_v12, %v152_v29  ;;  %v3114_v37 = vrot.slane %v124_v12, %v148_v32  ;;  %v3163_v20 = vld [vmem:[%s2928_s9] sm:$0xff]  ;;  %s3429_s9 = sld [smem:[#allocation14_spill]]  ;;  %s2911_s22 = smov [#allocation5]  }
  0x39   :  { %s2179_s23 = sshll.u32 %s2911_s22, 4  ;;  %s2180_s23 = int_to_ptr.vmem [resolvable:$true] %s2179_s23 }
  0x3a   :  { %s2777_s26 = scalar_lea.vmem %s2180_s23, 128  ;;  %p2782_p1 = scmp.lt.s32.totalorder %s2180_s23, %s2180_s23 }
  0x3b   :  { %p2778_p0 = scmp.ne.s32.totalorder %s2180_s23, %s2777_s26  ;;  %p2783_p2 = scmp.lt.s32.totalorder %s2777_s26, %s2777_s26 }
  0x3d   :  { %p2784_p3 = por %p2783_p2, %p2782_p1 }
  0x3f   :  { %p2785_p4 = pnand %p2784_p3, %p2778_p0 }
 0x105   :  { %v3080_v4 = vpop.f32.mrb[0].mxu0 }
 0x106   :  { %v236_v5 = vpop.f32.mrb[1].mxu0 }
 0x107   :  { %v245_v6 = vmax.f32 %v236_v5, 0.0 }
 0x109   :  { %255 = vrot.lane.b32.xlu1 %v245_v6, %s2901_s0  ;;  %247 = vrot.lane.b32.xlu0 %v245_v6, %s2902_s25 }
 0x10d   :  { %259 = vrot.lane.b32.xlu1 %v245_v6, %s2903_s7  ;;  %251 = vrot.lane.b32.xlu0 %v245_v6, %s2904_s10 }
 0x111   :  { %267 = vrot.lane.b32.xlu1 %v245_v6, %s2905_s11  ;;  %263 = vrot.lane.b32.xlu0 %v245_v6, %s2906_s15 }
 0x115   :  { %275 = vrot.lane.b32.xlu1 %v245_v6, %s2909_s16  ;;  %271 = vrot.lane.b32.xlu0 %v245_v6, %s2910_s18 }
 0x17b   :  { %v256_v14 = vpop.permute.xlu1 %255  ;;  %v248_v15 = vpop.permute.xlu0 %247 }
 0x17c   :  { %v249_v24 = vmul.f32 %v248_v15, %v3096_v17  ;;  %v257_v31 = vmul.f32 %v256_v14, %v3102_v23 }
 0x17f   :  { %v260_v21 = vpop.permute.xlu1 %259  ;;  %v252_v22 = vpop.permute.xlu0 %251 }
 0x180   :  { %v253_v25 = vmul.f32 %v252_v22, %v3098_v18  ;;  %v261_v26 = vmul.f32 %v260_v21, %v3100_v19  ;;  %v557_v21 = vld [vmem:[%s2973_s19] sm:$0xff]  ;;  %v558_v22 = vld [vmem:[%s2973_s19 + $0x8] sm:$0xff]  ;;  %s3436_s19 = sld [smem:[#allocation21_spill]] }
 0x182   :  { %v2627_v28 = vpack.c.bf16 %v253_v25, %v249_v24  ;;  %v2630_v33 = vpack.c.bf16 %v261_v26, %v257_v31 }
 0x183   :  { %v264_v30 = vpop.permute.xlu0 %263  ;;  %v268_v38 = vpop.permute.xlu1 %267 }
 0x184   :  { %2628 = vmatpush3.bf16.msra.mxu1 %v2627_v28  ;;  %v265_v34 = vmul.f32 %v264_v30, %v3107_v27  ;;  %v269_v41 = vmul.f32 %v268_v38, %v3114_v37 }
 0x185   :  { %2629 = vmatprep.subr.bf16.mxu1 %v2900_v3 }
 0x186   :  { %v2633_v39 = vpack.c.bf16 %v265_v34, %v245_v6 }
 0x187   :  { %v272_v36 = vpop.permute.xlu0 %271  ;;  %v276_v44 = vpop.permute.xlu1 %275 }
 0x188   :  { %2631 = vmatpush3.bf16.msra.mxu1 %v2630_v33  ;;  %v273_v40 = vmul.f32 %v272_v36, %v3112_v35  ;;  %v277_v45 = vmul.f32 %v3121_v43, %v276_v44 }
 0x189   :  { %2632 = vmatprep.subr.bf16.mxu1 %v2900_v3 }
 0x18a   :  { %v2636_v42 = vpack.c.bf16 %v273_v40, %v269_v41 }
 0x18c   :  { %2634 = vmatpush3.bf16.msra.mxu1 %v2633_v39 }
 0x18d   :  { %2635 = vmatprep.subr.bf16.mxu1 %v2900_v3 }
 0x190   :  { %2637 = vmatpush3.bf16.msra.mxu1 %v2636_v42 }
 0x191   :  { %2414 = vmatprep.subr.mxu1 %v2907_v7 }
 0x194   :  { %2415 = vmatpush3.msra.mxu1 %v277_v45 }
 0x195   :  { %2417 = vmatmul.mubr.msk.f32.vlgmr.msra.gmra.mrb[0].mxu1 %vm288_vm2, %v160_v46  ;;  %2450 = vmatprep.subr.mxu1 %v3071_v0 }
 0x196   :  { %2451 = vmatpush3.msra.mxu1 %v3071_v0  ;;  %2452 = vmatprep.mubr.msk.f32.mxu1 %vm163_vm0, %v555_v54 }
 0x197   :  { %2476 = vmatprep.subr.mxu1 %v2907_v7 }
 0x199   :  { %2453 = vmatmul.mubr.msk.f32.vlgmr.msra.gmra.mrb[2].mxu1 %vm163_vm0, %v556_v55 }
 0x19a   :  { %2478 = vmatprep.mubr.msk.f32.mxu1 %vm2908_vm1, %v2907_v7 }
 0x268   :  { %v358_v47 = vpop.f32.mrb[0].mxu1 }
 0x269   :  { %v362_v48 = vmax.f32 %v358_v47, 0.0  ;;  %v2418_v49 = vpop.f32.mrb[1].mxu1 }
 0x26b   :  { %2420 = vmatpush3.msra.mxu0 %v362_v48 }
 0x26c   :  { %2422 = vmatmul.mubr.msk.f32.vlgmr.msra.gmra.mrb[2].mxu0 %vm163_vm0, %v161_v50  ;;  %2638 = vmatprep.subr.bf16.mxu0 %v2900_v3  ;;  %v2454_v24 = vpop.f32.mrb[2].mxu1 }
 0x26d   :  { %2442 = vmatprep.mubr.msk.f32.mxu0 %vm2908_vm1, %v2907_v7  ;;  %v715_v25 = vpop.f32.mrb[3].mxu1 }
 0x33f   :  { %v432_v51 = vpop.f32.mrb[2].mxu0 }
 0x340   :  { %v436_v52 = vmax.f32 %v432_v51, 0.0  ;;  %v2423_v53 = vpop.f32.mrb[3].mxu0 }
 0x342   :  { %442 = vrot.lane.b32.xlu1 %v436_v52, %s2904_s10  ;;  %438 = vrot.lane.b32.xlu0 %v436_v52, %s2902_s25 }
 0x346   :  { %450 = vrot.lane.b32.xlu1 %v436_v52, %s2903_s7  ;;  %446 = vrot.lane.b32.xlu0 %v436_v52, %s2901_s0 }
 0x34a   :  { %458 = vrot.lane.b32.xlu1 %v436_v52, %s2905_s11  ;;  %454 = vrot.lane.b32.xlu0 %v436_v52, %s2906_s15 }
 0x34e   :  { %466 = vrot.lane.b32.xlu1 %v436_v52, %s2909_s16  ;;  %462 = vrot.lane.b32.xlu0 %v436_v52, %s2910_s18 }
 0x3b4   :  { %v443_v56 = vpop.permute.xlu1 %442  ;;  %v439_v57 = vpop.permute.xlu0 %438 }
 0x3b5   :  { %v444_v58 = vmul.f32 %v443_v56, %v3098_v18  ;;  %v440_v59 = vmul.f32 %v439_v57, %v3096_v17 }
 0x3b7   :  { %v2639_v60 = vpack.c.bf16 %v444_v58, %v440_v59  ;;  %v559_v59 = vld [vmem:[%s2978_s24] sm:$0xff]  ;;  %s3437_s24 = sld [smem:[#allocation13_spill]] }
 0x3b8   :  { %v451_v61 = vpop.permute.xlu1 %450  ;;  %v447_v62 = vpop.permute.xlu0 %446 }
 0x3b9   :  { %v452_v63 = vmul.f32 %v451_v61, %v3100_v19  ;;  %v448_v1 = vmul.f32 %v447_v62, %v3102_v23  ;;  %2640 = vmatpush3.bf16.msra.mxu0 %v2639_v60  ;;  %v1035_v60 = vld [vmem:[%s2998_s20] sm:$0xff]  ;;  %v1036_v61 = vld [vmem:[%s2998_s20 + $0x8] sm:$0xff]  ;;  %s3439_s20 = sld [smem:[#allocation23_spill]] }
 0x3ba   :  { %2641 = vmatprep.subr.bf16.mxu0 %v2900_v3  ;;  %v1033_v62 = vld [vmem:[%s2993_s12] sm:$0xff] }
 0x3bb   :  { %v2642_v2 = vpack.c.bf16 %v452_v63, %v448_v1  ;;  %v3212_v63 = vld [vmem:[%s2933_s13] sm:$0xff]  ;;  %v1034_v1 = vld [vmem:[%s2993_s12 + $0x8] sm:$0xff]  ;;  %s3430_s13 = sld [smem:[#allocation15_spill]]  ;;  %s3438_s12 = sld [smem:[#allocation22_spill]] }
 0x3bc   :  { %v455_v5 = vpop.permute.xlu0 %454  ;;  %v459_v8 = vpop.permute.xlu1 %458 }
 0x3bd   :  { %v456_v6 = vmul.f32 %v455_v5, %v3107_v27  ;;  %2643 = vmatpush3.bf16.msra.mxu0 %v2642_v2  ;;  %v460_v11 = vmul.f32 %v459_v8, %v3114_v37  ;;  %v1037_v2 = vld [vmem:[%s3003_s27] sm:$0xff]  ;;  %v1038_v5 = vld [vmem:[%s3003_s27 + $0x8] sm:$0xff]  ;;  %s3440_s27 = sld [smem:[#allocation24_spill]] }
 0x3be   :  { %2644 = vmatprep.subr.bf16.mxu0 %v2900_v3 }
 0x3bf   :  { %v2645_v9 = vpack.c.bf16 %v456_v6, %v436_v52 }
 0x3c0   :  { %v463_v10 = vpop.permute.xlu0 %462  ;;  %v467_v14 = vpop.permute.xlu1 %466 }
 0x3c1   :  { %v464_v12 = vmul.f32 %v463_v10, %v3112_v35  ;;  %2646 = vmatpush3.bf16.msra.mxu0 %v2645_v9  ;;  %v468_v15 = vmul.f32 %v3121_v43, %v467_v14  ;;  %v560_v9 = vld [vmem:[%s3429_s9] sm:$0xff] }
 0x3c2   :  { %2647 = vmatprep.subr.bf16.mxu0 %v2900_v3 }
 0x3c3   :  { %v2648_v13 = vpack.c.bf16 %v464_v12, %v460_v11 }
 0x3c5   :  { %2649 = vmatpush3.bf16.msra.mxu0 %v2648_v13 }
 0x3c6   :  { %2440 = vmatprep.subr.mxu0 %v2907_v7 }
 0x3c9   :  { %2441 = vmatpush3.msra.mxu0 %v468_v15 }
 0x3ca   :  { %2443 = vmatmul.mubr.msk.f32.vlgmr.msra.gmra.mrb[4].mxu0 %vm288_vm2, %v162_v16  ;;  %2445 = vmatprep.subr.mxu0 %v3163_v20 }
 0x3cb   :  { %2446 = vmatpush3.msra.mxu0 %v3163_v20  ;;  %2447 = vmatprep.mubr.msk.f32.mxu0 %vm163_vm0, %v557_v21 }
 0x3cc   :  { %2650 = vmatprep.subr.bf16.mxu0 %v2900_v3 }
 0x3ce   :  { %2448 = vmatmul.mubr.msk.f32.vlgmr.msra.gmra.mrb[6].mxu0 %vm163_vm0, %v558_v22 }
 0x3cf   :  { %2473 = vmatprep.mubr.msk.f32.mxu0 %vm2908_vm1, %v2907_v7 }
 0x49d   :  { %v548_v26 = vpop.f32.mrb[4].mxu0 }
 0x49e   :  { %v552_v28 = vmax.f32 %v548_v26, 0.0  ;;  %v2444_v29 = vpop.f32.mrb[5].mxu0 }
 0x4a0   :  { %v553_v30 = vadd.f32 %v3080_v4, %v552_v28 }
 0x4a1   :  { %v2449_v31 = vpop.f32.mrb[6].mxu0 }
 0x4a2   :  { %v3176_v32 = vadd.f32 %v2454_v24, %v2449_v31  ;;  %v634_v33 = vpop.f32.mrb[7].mxu0  ;;  %v3179_v34 = vsub.f32 %v3163_v20, %v553_v30 }
 0x4a3   :  { %v716_v36 = vadd.f32 %v715_v25, %v634_v33 }
 0x4a4   :  { %2160 = vst [vmem:[#allocation5] sm:$0xff] %v3179_v34 }
 0x4a5   :  { %v724_v38 = vmax.f32 %v716_v36, 0.0 }
 0x4a7   :  { %730 = vrot.lane.b32.xlu1 %v724_v38, %s2904_s10  ;;  %726 = vrot.lane.b32.xlu0 %v724_v38, %s2902_s25 }
 0x4ab   :  { %738 = vrot.lane.b32.xlu1 %v724_v38, %s2903_s7  ;;  %734 = vrot.lane.b32.xlu0 %v724_v38, %s2901_s0 }
 0x4af   :  { %746 = vrot.lane.b32.xlu1 %v724_v38, %s2905_s11  ;;  %742 = vrot.lane.b32.xlu0 %v724_v38, %s2906_s15 }
 0x4b3   :  { %754 = vrot.lane.b32.xlu1 %v724_v38, %s2909_s16  ;;  %750 = vrot.lane.b32.xlu0 %v724_v38, %s2910_s18 }
 0x519   :  { %v731_v4 = vpop.permute.xlu1 %730  ;;  %v727_v39 = vpop.permute.xlu0 %726 }
 0x51a   :  { %v732_v40 = vmul.f32 %v731_v4, %v3098_v18  ;;  %v728_v41 = vmul.f32 %v727_v39, %v3096_v17 }
 0x51c   :  { %v2651_v42 = vpack.c.bf16 %v732_v40, %v728_v41 }
 0x51d   :  { %v739_v44 = vpop.permute.xlu1 %738  ;;  %v735_v45 = vpop.permute.xlu0 %734 }
 0x51e   :  { %v740_v46 = vmul.f32 %v739_v44, %v3100_v19  ;;  %v736_v47 = vmul.f32 %v735_v45, %v3102_v23  ;;  %2652 = vmatpush3.bf16.msra.mxu0 %v2651_v42 }
 0x51f   :  { %2653 = vmatprep.subr.bf16.mxu0 %v2900_v3 }
 0x520   :  { %v2654_v48 = vpack.c.bf16 %v740_v46, %v736_v47 }
 0x521   :  { %v743_v49 = vpop.permute.xlu0 %742  ;;  %v747_v51 = vpop.permute.xlu1 %746 }
 0x522   :  { %v744_v50 = vmul.f32 %v743_v49, %v3107_v27  ;;  %2655 = vmatpush3.bf16.msra.mxu0 %v2654_v48  ;;  %v748_v54 = vmul.f32 %v747_v51, %v3114_v37  ;;  %v561_v49 = vld [vmem:[%s3430_s13] sm:$0xff] }
 0x523   :  { %2656 = vmatprep.subr.bf16.mxu0 %v2900_v3 }
 0x524   :  { %v2657_v52 = vpack.c.bf16 %v744_v50, %v724_v38 }
 0x525   :  { %v751_v53 = vpop.permute.xlu0 %750  ;;  %v755_v57 = vpop.permute.xlu1 %754 }
 0x526   :  { %v752_v55 = vmul.f32 %v751_v53, %v3112_v35  ;;  %2658 = vmatpush3.bf16.msra.mxu0 %v2657_v52  ;;  %v756_v58 = vmul.f32 %v3121_v43, %v755_v57 }
 0x527   :  { %2659 = vmatprep.subr.bf16.mxu0 %v2900_v3 }
 0x528   :  { %v2660_v56 = vpack.c.bf16 %v752_v55, %v748_v54 }
 0x52a   :  { %2661 = vmatpush3.bf16.msra.mxu0 %v2660_v56 }
 0x52b   :  { %2471 = vmatprep.subr.mxu0 %v2907_v7 }
 0x52e   :  { %2472 = vmatpush3.msra.mxu0 %v756_v58 }
 0x52f   :  { %2474 = vmatmul.mubr.msk.f32.vlgmr.msra.gmra.mrb[8].mxu0 %vm288_vm2, %v559_v59  ;;  %2502 = vmatprep.subr.mxu0 %v3163_v20 }
 0x530   :  { %2503 = vmatpush3.msra.mxu0 %v3163_v20  ;;  %2504 = vmatprep.mubr.msk.f32.mxu0 %vm163_vm0, %v1035_v60 }
 0x531   :  { %2507 = vmatprep.subr.mxu0 %v3071_v0 }
 0x533   :  { %2505 = vmatmul.mubr.msk.f32.vlgmr.msra.gmra.mrb[10].mxu0 %vm163_vm0, %v1036_v61 }
 0x534   :  { %2508 = vmatpush3.msra.mxu0 %v3071_v0  ;;  %2509 = vmatprep.mubr.msk.f32.mxu0 %vm163_vm0, %v1033_v62 }
 0x535   :  { %2512 = vmatprep.subr.mxu0 %v3212_v63 }
 0x53b   :  { %2510 = vmatmul.mubr.msk.f32.vlgmr.msra.gmra.mrb[10].mxu0 %vm163_vm0, %v1034_v1 }
 0x53c   :  { %2513 = vmatpush3.msra.mxu0 %v3212_v63  ;;  %2514 = vmatprep.mubr.msk.f32.mxu0 %vm163_vm0, %v1037_v2 }
 0x53d   :  { %2538 = vmatprep.subr.mxu0 %v2907_v7 }
 0x543   :  { %2515 = vmatmul.mubr.msk.f32.vlgmr.msra.gmra.mrb[10].mxu0 %vm163_vm0, %v1038_v5 }
 0x544   :  { %2540 = vmatprep.mubr.msk.f32.mxu0 %vm2908_vm1, %v2907_v7 }
 0x602   :  { %v836_v0 = vpop.f32.mrb[8].mxu0 }
 0x603   :  { %v840_v6 = vmax.f32 %v836_v0, 0.0  ;;  %v2475_v8 = vpop.f32.mrb[9].mxu0  ;;  %v1039_v0 = vld [vmem:[%s3431_s21] sm:$0xff] }
 0x605   :  { %2477 = vmatpush3.msra.mxu1 %v840_v6  ;;  %v1598_v6 = vld [vmem:[%s3432_s29] sm:$0xff] }
 0x606   :  { %2479 = vmatmul.mubr.msk.f32.vlgmr.msra.gmra.mrb[4].mxu1 %vm163_vm0, %v560_v9  ;;  %2662 = vmatprep.subr.bf16.mxu1 %v2900_v3 }
 0x607   :  { %2499 = vmatprep.mubr.msk.f32.mxu1 %vm2908_vm1, %v2907_v7 }
 0x616   :  { %v3233_v10 = vpop.f32.mrb[10].mxu0 }
 0x617   :  { %v1276_v11 = vpop.f32.mrb[11].mxu0 }
 0x618   :  { %v3241_v15 = vmax.f32 %v1276_v11, 0.0 }
 0x6d9   :  { %v910_v12 = vpop.f32.mrb[4].mxu1 }
 0x6da   :  { %v914_v13 = vmax.f32 %v910_v12, 0.0  ;;  %v2480_v14 = vpop.f32.mrb[5].mxu1 }
 0x6db   :  { %v1599_v14 = vld [vmem:[%s3432_s29 + $0x8] sm:$0xff] }
 0x6dc   :  { %920 = vrot.lane.b32.xlu1 %v914_v13, %s2904_s10  ;;  %916 = vrot.lane.b32.xlu0 %v914_v13, %s2902_s25 }
 0x6e0   :  { %928 = vrot.lane.b32.xlu1 %v914_v13, %s2903_s7  ;;  %924 = vrot.lane.b32.xlu0 %v914_v13, %s2901_s0 }
 0x6e4   :  { %936 = vrot.lane.b32.xlu1 %v914_v13, %s2905_s11  ;;  %932 = vrot.lane.b32.xlu0 %v914_v13, %s2906_s15 }
 0x6e8   :  { %940 = vrot.lane.b32.xlu0 %v914_v13, %s2910_s18  ;;  %1293 = vrot.lane.b32.xlu1 %v3241_v15, %s2904_s10 }
 0x6ec   :  { %944 = vrot.lane.b32.xlu1 %v914_v13, %s2909_s16  ;;  %1289 = vrot.lane.b32.xlu0 %v3241_v15, %s2902_s25 }
 0x6f0   :  { %1301 = vrot.lane.b32.xlu1 %v3241_v15, %s2903_s7  ;;  %1297 = vrot.lane.b32.xlu0 %v3241_v15, %s2901_s0 }
 0x6f4   :  { %1309 = vrot.lane.b32.xlu1 %v3241_v15, %s2905_s11  ;;  %1305 = vrot.lane.b32.xlu0 %v3241_v15, %s2906_s15 }
 0x6f8   :  { %1317 = vrot.lane.b32.xlu1 %v3241_v15, %s2909_s16  ;;  %1313 = vrot.lane.b32.xlu0 %v3241_v15, %s2910_s18 }
 0x74e   :  { %v921_v16 = vpop.permute.xlu1 %920  ;;  %v917_v20 = vpop.permute.xlu0 %916 }
 0x74f   :  { %v922_v21 = vmul.f32 %v921_v16, %v3098_v18  ;;  %v918_v22 = vmul.f32 %v917_v20, %v3096_v17 }
 0x751   :  { %v2663_v24 = vpack.c.bf16 %v922_v21, %v918_v22  ;;  %v1040_v21 = vld [vmem:[%s3433_s3] sm:$0xff] }
 0x752   :  { %v929_v25 = vpop.permute.xlu1 %928  ;;  %v925_v26 = vpop.permute.xlu0 %924 }
 0x753   :  { %v930_v28 = vmul.f32 %v929_v25, %v3100_v19  ;;  %v926_v29 = vmul.f32 %v925_v26, %v3102_v23  ;;  %2664 = vmatpush3.bf16.msra.mxu1 %v2663_v24 }
 0x754   :  { %2665 = vmatprep.subr.bf16.mxu1 %v2900_v3 }
 0x755   :  { %v2666_v30 = vpack.c.bf16 %v930_v28, %v926_v29 }
 0x756   :  { %v937_v31 = vpop.permute.xlu1 %936  ;;  %v933_v33 = vpop.permute.xlu0 %932 }
 0x757   :  { %v934_v36 = vmul.f32 %v933_v33, %v3107_v27  ;;  %2667 = vmatpush3.bf16.msra.mxu1 %v2666_v30  ;;  %v938_v40 = vmul.f32 %v937_v31, %v3114_v37 }
 0x758   :  { %2668 = vmatprep.subr.bf16.mxu1 %v2900_v3 }
 0x759   :  { %v2669_v38 = vpack.c.bf16 %v934_v36, %v914_v13 }
 0x75a   :  { %v941_v4 = vpop.permute.xlu0 %940  ;;  %v1294_v39 = vpop.permute.xlu1 %1293 }
 0x75b   :  { %v942_v41 = vmul.f32 %v941_v4, %v3112_v35  ;;  %2670 = vmatpush3.bf16.msra.mxu1 %v2669_v38  ;;  %v1295_v47 = vmul.f32 %v1294_v39, %v3098_v18 }
 0x75c   :  { %2671 = vmatprep.subr.bf16.mxu1 %v2900_v3 }
 0x75d   :  { %v2672_v42 = vpack.c.bf16 %v942_v41, %v938_v40 }
 0x75e   :  { %v945_v44 = vpop.permute.xlu1 %944  ;;  %v1290_v45 = vpop.permute.xlu0 %1289 }
 0x75f   :  { %v1291_v46 = vmul.f32 %v1290_v45, %v3096_v17  ;;  %2673 = vmatpush3.bf16.msra.mxu1 %v2672_v42  ;;  %v946_v48 = vmul.f32 %v3121_v43, %v945_v44 }
 0x760   :  { %2497 = vmatprep.subr.mxu1 %v2907_v7 }
 0x761   :  { %v2675_v52 = vpack.c.bf16 %v1295_v47, %v1291_v46 }
 0x762   :  { %v1302_v50 = vpop.permute.xlu1 %1301  ;;  %v1298_v51 = vpop.permute.xlu0 %1297 }
 0x763   :  { %v1303_v53 = vmul.f32 %v1302_v50, %v3100_v19  ;;  %v1299_v54 = vmul.f32 %v1298_v51, %v3102_v23  ;;  %2498 = vmatpush3.msra.mxu1 %v946_v48  ;;  %v1041_v48 = vld [vmem:[%s3434_s8] sm:$0xff]  ;;  %v1597_v50 = vld [vmem:[%s3435_s14 + $0x8] sm:$0xff] }
 0x764   :  { %2500 = vmatmul.mubr.msk.f32.vlgmr.msra.gmra.mrb[6].mxu1 %vm288_vm2, %v561_v49  ;;  %2674 = vmatprep.subr.bf16.mxu1 %v2900_v3  ;;  %v1596_v49 = vld [vmem:[%s3435_s14] sm:$0xff] }
 0x765   :  { %2676 = vmatpush3.bf16.msra.mxu1 %v2675_v52  ;;  %2535 = vmatprep.mubr.msk.f32.mxu1 %vm2908_vm1, %v2907_v7  ;;  %v2678_v56 = vpack.c.bf16 %v1303_v53, %v1299_v54  ;;  %v1600_v51 = vld [vmem:[%s3436_s19] sm:$0xff] }
 0x766   :  { %v1306_v55 = vpop.permute.xlu0 %1305  ;;  %2677 = vmatprep.subr.bf16.mxu1 %v2900_v3  ;;  %v1310_v58 = vpop.permute.xlu1 %1309 }
 0x767   :  { %v1307_v57 = vmul.f32 %v1306_v55, %v3107_v27  ;;  %v1311_v62 = vmul.f32 %v1310_v58, %v3114_v37  ;;  %v123_v55 = vld [vmem:[%s3437_s24] sm:$0xff]  ;;  %v1601_v58 = vld [vmem:[%s3436_s19 + $0x8] sm:$0xff] }
 0x769   :  { %2679 = vmatpush3.bf16.msra.mxu1 %v2678_v56  ;;  %v2681_v60 = vpack.c.bf16 %v1307_v57, %v3241_v15 }
 0x76a   :  { %v1314_v59 = vpop.permute.xlu0 %1313  ;;  %2680 = vmatprep.subr.bf16.mxu1 %v2900_v3  ;;  %v1318_v2 = vpop.permute.xlu1 %1317 }
 0x76b   :  { %v1315_v61 = vmul.f32 %v1314_v59, %v3112_v35  ;;  %v1319_v5 = vmul.f32 %v3121_v43, %v1318_v2 }
 0x76d   :  { %2682 = vmatpush3.bf16.msra.mxu1 %v2681_v60  ;;  %v2684_v1 = vpack.c.bf16 %v1315_v61, %v1311_v62 }
 0x76e   :  { %2683 = vmatprep.subr.bf16.mxu1 %v2900_v3 }
 0x771   :  { %2685 = vmatpush3.bf16.msra.mxu1 %v2684_v1 }
 0x772   :  { %2533 = vmatprep.subr.mxu1 %v2907_v7 }
 0x775   :  { %2534 = vmatpush3.msra.mxu1 %v1319_v5 }
 0x776   :  { %2536 = vmatmul.mubr.msk.f32.vlgmr.msra.gmra.mrb[8].mxu1 %vm288_vm2, %v1039_v0 }
 0x777   :  { %2566 = vmatprep.mubr.msk.f32.mxu1 %vm163_vm0, %v1598_v6 }
 0x837   :  { %v1026_v8 = vpop.f32.mrb[6].mxu1 }
 0x838   :  { %v1030_v9 = vmax.f32 %v1026_v8, 0.0  ;;  %v2501_v11 = vpop.f32.mrb[7].mxu1 }
 0x83a   :  { %v1031_v12 = vadd.f32 %v1030_v9, %v3176_v32 }
 0x83c   :  { %v1032_v13 = vsub.f32 %v3212_v63, %v1031_v12 }
 0x83e   :  { %2564 = vmatprep.subr.mxu1 %v1032_v13  ;;  %2161 = vst [vmem:[#allocation7] sm:$0xff] %v1032_v13 }
 0x83f   :  { %2565 = vmatpush3.msra.mxu1 %v1032_v13 }
 0x840   :  { %2569 = vmatprep.subr.mxu1 %v3179_v34  ;;  %2567 = vmatmul.mubr.msk.f32.vlgmr.msra.gmra.mrb[10].mxu1 %vm163_vm0, %v1599_v14 }
 0x841   :  { %2570 = vmatpush3.msra.mxu1 %v3179_v34  ;;  %2571 = vmatprep.mubr.msk.f32.mxu1 %vm163_vm0, %v1596_v49 }
 0x848   :  { %2572 = vmatmul.mubr.msk.f32.vlgmr.msra.gmra.mrb[10].mxu1 %vm163_vm0, %v1597_v50 }
 0x849   :  { %v1399_v15 = vpop.f32.mrb[8].mxu1  ;;  %2576 = vmatprep.mubr.msk.f32.mxu1 %vm163_vm0, %v1600_v51  ;;  %v1604_v51 = vld [vmem:[%s3440_s27] sm:$0xff] }
 0x84a   :  { %v1403_v16 = vmax.f32 %v1399_v15, 0.0  ;;  %v2537_v20 = vpop.f32.mrb[9].mxu1 }
 0x84c   :  { %2539 = vmatpush3.msra.mxu0 %v1403_v16 }
 0x84d   :  { %2541 = vmatmul.mubr.msk.f32.vlgmr.msra.gmra.mrb[12].mxu0 %vm163_vm0, %v1040_v21  ;;  %2686 = vmatprep.subr.bf16.mxu0 %v2900_v3 }
 0x84e   :  { %2561 = vmatprep.mubr.msk.f32.mxu0 %vm2908_vm1, %v2907_v7 }
 0x920   :  { %v1473_v32 = vpop.f32.mrb[12].mxu0 }
 0x921   :  { %v1477_v63 = vmax.f32 %v1473_v32, 0.0  ;;  %v2542_v22 = vpop.f32.mrb[13].mxu0 }
 0x923   :  { %1483 = vrot.lane.b32.xlu1 %v1477_v63, %s2904_s10  ;;  %1479 = vrot.lane.b32.xlu0 %v1477_v63, %s2902_s25 }
 0x927   :  { %1491 = vrot.lane.b32.xlu1 %v1477_v63, %s2903_s7  ;;  %1487 = vrot.lane.b32.xlu0 %v1477_v63, %s2901_s0 }
 0x92b   :  { %1499 = vrot.lane.b32.xlu1 %v1477_v63, %s2905_s11  ;;  %1495 = vrot.lane.b32.xlu0 %v1477_v63, %s2906_s15 }
 0x92f   :  { %1507 = vrot.lane.b32.xlu1 %v1477_v63, %s2909_s16  ;;  %1503 = vrot.lane.b32.xlu0 %v1477_v63, %s2910_s18 }
 0x995   :  { %v1484_v34 = vpop.permute.xlu1 %1483  ;;  %v1480_v24 = vpop.permute.xlu0 %1479 }
 0x996   :  { %v1485_v25 = vmul.f32 %v1484_v34, %v3098_v18  ;;  %v1481_v26 = vmul.f32 %v1480_v24, %v3096_v17  ;;  %v1602_v34 = vld [vmem:[%s3438_s12] sm:$0xff] }
 0x998   :  { %v2687_v28 = vpack.c.bf16 %v1485_v25, %v1481_v26 }
 0x999   :  { %v1492_v29 = vpop.permute.xlu1 %1491  ;;  %v1488_v30 = vpop.permute.xlu0 %1487 }
 0x99a   :  { %v1493_v31 = vmul.f32 %v1492_v29, %v3100_v19  ;;  %v1489_v33 = vmul.f32 %v1488_v30, %v3102_v23  ;;  %2688 = vmatpush3.bf16.msra.mxu0 %v2687_v28  ;;  %v1603_v28 = vld [vmem:[%s3439_s20] sm:$0xff] }
 0x99b   :  { %2689 = vmatprep.subr.bf16.mxu0 %v2900_v3 }
 0x99c   :  { %v2690_v36 = vpack.c.bf16 %v1493_v31, %v1489_v33 }
 0x99d   :  { %v1496_v38 = vpop.permute.xlu0 %1495  ;;  %v1500_v39 = vpop.permute.xlu1 %1499 }
 0x99e   :  { %v1497_v4 = vmul.f32 %v1496_v38, %v3107_v27  ;;  %2691 = vmatpush3.bf16.msra.mxu0 %v2690_v36  ;;  %v1501_v42 = vmul.f32 %v1500_v39, %v3114_v37 }
 0x99f   :  { %2692 = vmatprep.subr.bf16.mxu0 %v2900_v3 }
 0x9a0   :  { %v2693_v40 = vpack.c.bf16 %v1497_v4, %v1477_v63 }
 0x9a1   :  { %v1504_v41 = vpop.permute.xlu0 %1503  ;;  %v1508_v46 = vpop.permute.xlu1 %1507 }
 0x9a2   :  { %v1505_v44 = vmul.f32 %v1504_v41, %v3112_v35  ;;  %2694 = vmatpush3.bf16.msra.mxu0 %v2693_v40  ;;  %v1509_v47 = vmul.f32 %v3121_v43, %v1508_v46 }
 0x9a3   :  { %2695 = vmatprep.subr.bf16.mxu0 %v2900_v3 }
 0x9a4   :  { %v2696_v45 = vpack.c.bf16 %v1505_v44, %v1501_v42 }
 0x9a6   :  { %2697 = vmatpush3.bf16.msra.mxu0 %v2696_v45 }
 0x9a7   :  { %2559 = vmatprep.subr.mxu0 %v2907_v7 }
 0x9aa   :  { %2560 = vmatpush3.msra.mxu0 %v1509_v47 }
 0x9ab   :  { %2562 = vmatmul.mubr.msk.f32.vlgmr.msra.gmra.mrb[14].mxu0 %vm288_vm2, %v1041_v48  ;;  %2698 = vmatprep.subr.bf16.mxu0 %v2900_v3 }
 0x9ac   :  { %2597 = vmatprep.mubr.msk.f32.mxu0 %vm2908_vm1, %v2907_v7 }
 0xa7e   :  { %v1589_v52 = vpop.f32.mrb[14].mxu0 }
 0xa7f   :  { %v1593_v53 = vmax.f32 %v1589_v52, 0.0  ;;  %v2563_v54 = vpop.f32.mrb[15].mxu0 }
 0xa81   :  { %v1594_v56 = vadd.f32 %v3233_v10, %v1593_v53 }
 0xa83   :  { %v1595_v57 = vsub.f32 %v123_v55, %v1594_v56 }
 0xa85   :  { %2574 = vmatprep.subr.mxu1 %v1595_v57  ;;  %2162 = vst [vmem:[#allocation8] sm:$0xff] %v1595_v57 }
 0xa86   :  { %2575 = vmatpush3.msra.mxu1 %v1595_v57 }
 0xa87   :  { %2577 = vmatmul.mubr.msk.f32.vlgmr.msra.gmra.mrb[10].mxu1 %vm163_vm0, %v1601_v58  ;;  %2600 = vmatprep.subr.mxu1 %v2907_v7 }
 0xa88   :  { %2602 = vmatprep.mubr.msk.f32.mxu1 %vm2908_vm1, %v2907_v7 }
 0xb5a   :  { %v3344_v59 = vpop.f32.mrb[10].mxu1 }
 0xb5b   :  { %v1839_v60 = vpop.f32.mrb[11].mxu1 }
 0xb5c   :  { %v1850_v61 = vmax.f32 %v1839_v60, 0.0 }
 0xb5e   :  { %1856 = vrot.lane.b32.xlu1 %v1850_v61, %s2904_s10  ;;  %1852 = vrot.lane.b32.xlu0 %v1850_v61, %s2902_s25 }
 0xb62   :  { %1864 = vrot.lane.b32.xlu1 %v1850_v61, %s2903_s7  ;;  %1860 = vrot.lane.b32.xlu0 %v1850_v61, %s2901_s0 }
 0xb66   :  { %1872 = vrot.lane.b32.xlu1 %v1850_v61, %s2905_s11  ;;  %1868 = vrot.lane.b32.xlu0 %v1850_v61, %s2906_s15 }
 0xb6a   :  { %1880 = vrot.lane.b32.xlu1 %v1850_v61, %s2909_s16  ;;  %1876 = vrot.lane.b32.xlu0 %v1850_v61, %s2910_s18 }
 0xbd0   :  { %v1857_v10 = vpop.permute.xlu1 %1856  ;;  %v1853_v62 = vpop.permute.xlu0 %1852 }
 0xbd1   :  { %v1858_v1 = vmul.f32 %v1857_v10, %v3098_v18  ;;  %v1854_v2 = vmul.f32 %v1853_v62, %v3096_v17 }
 0xbd3   :  { %v2699_v5 = vpack.c.bf16 %v1858_v1, %v1854_v2 }
 0xbd4   :  { %v1865_v0 = vpop.permute.xlu1 %1864  ;;  %v1861_v6 = vpop.permute.xlu0 %1860 }
 0xbd5   :  { %v1866_v8 = vmul.f32 %v1865_v0, %v3100_v19  ;;  %v1862_v9 = vmul.f32 %v1861_v6, %v3102_v23  ;;  %2700 = vmatpush3.bf16.msra.mxu0 %v2699_v5 }
 0xbd6   :  { %2701 = vmatprep.subr.bf16.mxu0 %v2900_v3 }
 0xbd7   :  { %v2702_v11 = vpack.c.bf16 %v1866_v8, %v1862_v9 }
 0xbd8   :  { %v1869_v12 = vpop.permute.xlu0 %1868  ;;  %v1873_v14 = vpop.permute.xlu1 %1872 }
 0xbd9   :  { %v1870_v13 = vmul.f32 %v1869_v12, %v3107_v27  ;;  %2703 = vmatpush3.bf16.msra.mxu0 %v2702_v11  ;;  %v1874_v20 = vmul.f32 %v1873_v14, %v3114_v37 }
 0xbda   :  { %2704 = vmatprep.subr.bf16.mxu0 %v2900_v3 }
 0xbdb   :  { %v2705_v15 = vpack.c.bf16 %v1870_v13, %v1850_v61 }
 0xbdc   :  { %v1877_v16 = vpop.permute.xlu0 %1876  ;;  %v1881_v63 = vpop.permute.xlu1 %1880 }
 0xbdd   :  { %v1878_v21 = vmul.f32 %v1877_v16, %v3112_v35  ;;  %2706 = vmatpush3.bf16.msra.mxu0 %v2705_v15  ;;  %v1882_v22 = vmul.f32 %v3121_v43, %v1881_v63 }
 0xbde   :  { %2707 = vmatprep.subr.bf16.mxu0 %v2900_v3 }
 0xbdf   :  { %v2708_v32 = vpack.c.bf16 %v1878_v21, %v1874_v20 }
 0xbe1   :  { %2709 = vmatpush3.bf16.msra.mxu0 %v2708_v32 }
 0xbe2   :  { %2595 = vmatprep.subr.mxu0 %v2907_v7 }
 0xbe5   :  { %2596 = vmatpush3.msra.mxu0 %v1882_v22 }
 0xbe6   :  { %2598 = vmatmul.mubr.msk.f32.vlgmr.msra.gmra.mrb[16].mxu0 %vm288_vm2, %v1602_v34 }
 0xcb9   :  { %v1962_v24 = vpop.f32.mrb[16].mxu0 }
 0xcba   :  { %v1966_v25 = vmax.f32 %v1962_v24, 0.0  ;;  %v2599_v26 = vpop.f32.mrb[17].mxu0 }
 0xcbc   :  { %2601 = vmatpush3.msra.mxu1 %v1966_v25 }
 0xcbd   :  { %2603 = vmatmul.mubr.msk.f32.vlgmr.msra.gmra.mrb[12].mxu1 %vm163_vm0, %v1603_v28  ;;  %2710 = vmatprep.subr.bf16.mxu1 %v2900_v3 }
 0xcbe   :  { %2623 = vmatprep.mubr.msk.f32.mxu1 %vm2908_vm1, %v2907_v7 }
 0xd90   :  { %v2036_v29 = vpop.f32.mrb[12].mxu1 }
 0xd91   :  { %v2040_v30 = vmax.f32 %v2036_v29, 0.0  ;;  %v2604_v31 = vpop.f32.mrb[13].mxu1 }
 0xd93   :  { %2046 = vrot.lane.b32.xlu1 %v2040_v30, %s2904_s10  ;;  %2042 = vrot.lane.b32.xlu0 %v2040_v30, %s2902_s25 }
 0xd97   :  { %2054 = vrot.lane.b32.xlu1 %v2040_v30, %s2903_s7  ;;  %2050 = vrot.lane.b32.xlu0 %v2040_v30, %s2901_s0 }
 0xd9b   :  { %2062 = vrot.lane.b32.xlu1 %v2040_v30, %s2905_s11  ;;  %2058 = vrot.lane.b32.xlu0 %v2040_v30, %s2906_s15 }
 0xd9f   :  { %2070 = vrot.lane.b32.xlu1 %v2040_v30, %s2909_s16  ;;  %2066 = vrot.lane.b32.xlu0 %v2040_v30, %s2910_s18 }
 0xe05   :  { %v2047_v33 = vpop.permute.xlu1 %2046  ;;  %v2043_v36 = vpop.permute.xlu0 %2042 }
 0xe06   :  { %v2048_v38 = vmul.f32 %v2047_v33, %v3098_v18  ;;  %v2044_v4 = vmul.f32 %v2043_v36, %v3096_v17 }
 0xe08   :  { %v2711_v39 = vpack.c.bf16 %v2048_v38, %v2044_v4 }
 0xe09   :  { %v2055_v40 = vpop.permute.xlu1 %2054  ;;  %v2051_v41 = vpop.permute.xlu0 %2050 }
 0xe0a   :  { %v2056_v42 = vmul.f32 %v2055_v40, %v3100_v19  ;;  %v2052_v44 = vmul.f32 %v2051_v41, %v3102_v23  ;;  %2712 = vmatpush3.bf16.msra.mxu1 %v2711_v39 }
 0xe0b   :  { %2713 = vmatprep.subr.bf16.mxu1 %v2900_v3 }
 0xe0c   :  { %v2714_v45 = vpack.c.bf16 %v2056_v42, %v2052_v44 }
 0xe0d   :  { %v2059_v46 = vpop.permute.xlu0 %2058  ;;  %v2063_v48 = vpop.permute.xlu1 %2062 }
 0xe0e   :  { %v2060_v47 = vmul.f32 %v2059_v46, %v3107_v27  ;;  %2715 = vmatpush3.bf16.msra.mxu1 %v2714_v45  ;;  %v2064_v49 = vmul.f32 %v2063_v48, %v3114_v37 }
 0xe0f   :  { %2716 = vmatprep.subr.bf16.mxu1 %v2900_v3 }
 0xe10   :  { %v2717_v17 = vpack.c.bf16 %v2060_v47, %v2040_v30 }
 0xe11   :  { %v2067_v18 = vpop.permute.xlu0 %2066  ;;  %v2071_v50 = vpop.permute.xlu1 %2070 }
 0xe12   :  { %v2068_v19 = vmul.f32 %v2067_v18, %v3112_v35  ;;  %2718 = vmatpush3.bf16.msra.mxu1 %v2717_v17  ;;  %v2072_v27 = vmul.f32 %v3121_v43, %v2071_v50 }
 0xe13   :  { %2719 = vmatprep.subr.bf16.mxu1 %v2900_v3 }
 0xe14   :  { %v2720_v23 = vpack.c.bf16 %v2068_v19, %v2064_v49 }
 0xe16   :  { %2721 = vmatpush3.bf16.msra.mxu1 %v2720_v23 }
 0xe17   :  { %2621 = vmatprep.subr.mxu1 %v2907_v7 }
 0xe1a   :  { %2622 = vmatpush3.msra.mxu1 %v2072_v27 }
 0xe1b   :  { %2624 = vmatmul.mubr.msk.f32.vlgmr.msra.gmra.mrb[14].mxu1 %vm288_vm2, %v1604_v51 }
 0xe1c   :  { %2788 = shalt.err (!%p2785_p4)
}
 0xe1d   :  { %s2789_s28 = scalar_lea.hbm %s3058_s6, 128 }
 0xe1e   :  { %p2790_p5 = scmp.ne.s32.totalorder %s3058_s6, %s2789_s28  ;;  %p2793_p6 = scmp.lt.u32.totalorder %s2789_s28, %s3058_s6 }
 0xe20   :  { %p2795_p7 = pnand %p2793_p6, %p2790_p5 }
 0xe22   :  { %2798 = shalt.err (!%p2795_p7)
}
 0xe23   :  { %2182 = dma.vmem_to_hbm [thread:$0]  %s2180_s23, 128, %s3058_s6, [#allocation6]  }
 0xe24   :  { %s2912_s1 = smov [#allocation7]  }
 0xe25   :  { %s2189_s2 = sshll.u32 %s2912_s1, 4  ;;  %s2190_s2 = int_to_ptr.vmem [resolvable:$true] %s2189_s2 }
 0xe26   :  { %s2799_s0 = scalar_lea.vmem %s2190_s2, 128  ;;  %p2804_p9 = scmp.lt.s32.totalorder %s2190_s2, %s2190_s2 }
 0xe27   :  { %p2800_p8 = scmp.ne.s32.totalorder %s2190_s2, %s2799_s0  ;;  %p2805_p10 = scmp.lt.s32.totalorder %s2799_s0, %s2799_s0 }
 0xe29   :  { %p2806_p11 = por %p2805_p10, %p2804_p9 }
 0xe2b   :  { %p2807_p12 = pnand %p2806_p11, %p2800_p8 }
 0xe2d   :  { %2810 = shalt.err (!%p2807_p12)
}
 0xe2e   :  { %s2811_s25 = scalar_lea.hbm %s3063_s30, 128 }
 0xe2f   :  { %p2812_p13 = scmp.ne.s32.totalorder %s3063_s30, %s2811_s25  ;;  %p2815_p0 = scmp.lt.u32.totalorder %s2811_s25, %s3063_s30 }
 0xe31   :  { %p2817_p1 = pnand %p2815_p0, %p2812_p13 }
 0xe33   :  { %2820 = shalt.err (!%p2817_p1)
}
 0xe34   :  { %2192 = dma.vmem_to_hbm [thread:$0]  %s2190_s2, 128, %s3063_s30, [#allocation6]  }
 0xe35   :  { %s2913_s6 = smov [#allocation8]  }
 0xe36   :  { %s2199_s7 = sshll.u32 %s2913_s6, 4  ;;  %s2200_s7 = int_to_ptr.vmem [resolvable:$true] %s2199_s7 }
 0xe37   :  { %s2821_s10 = scalar_lea.vmem %s2200_s7, 128  ;;  %p2826_p3 = scmp.lt.s32.totalorder %s2200_s7, %s2200_s7 }
 0xe38   :  { %p2822_p2 = scmp.ne.s32.totalorder %s2200_s7, %s2821_s10  ;;  %p2827_p4 = scmp.lt.s32.totalorder %s2821_s10, %s2821_s10 }
 0xe3a   :  { %p2828_p5 = por %p2827_p4, %p2826_p3 }
 0xe3c   :  { %p2829_p6 = pnand %p2828_p5, %p2822_p2 }
 0xe3e   :  { %2832 = shalt.err (!%p2829_p6)
}
 0xe3f   :  { %s2833_s11 = scalar_lea.hbm %s3068_s4, 128 }
 0xe40   :  { %p2834_p7 = scmp.ne.s32.totalorder %s3068_s4, %s2833_s11  ;;  %p2837_p8 = scmp.lt.u32.totalorder %s2833_s11, %s3068_s4 }
 0xe42   :  { %p2839_p9 = pnand %p2837_p8, %p2834_p7 }
 0xe44   :  { %2842 = shalt.err (!%p2839_p9)
}
 0xe45   :  { %2202 = dma.vmem_to_hbm [thread:$0]  %s2200_s7, 128, %s3068_s4, [#allocation9]   ;;  %v2776_v43 = vld [vmem:[%s2923_s5] sm:$0xff] }
 0xe46   :  { %s2914_s30 = smov [#allocation3]  }
 0xe47   :  { %s2169_s15 = sshll.u32 %s2914_s30, 4  ;;  %s2170_s15 = int_to_ptr.vmem [resolvable:$true] %s2169_s15 }
 0xe48   :  { %s2843_s16 = scalar_lea.vmem %s2170_s15, 128  ;;  %p2848_p11 = scmp.lt.s32.totalorder %s2170_s15, %s2170_s15 }
 0xe49   :  { %p2844_p10 = scmp.ne.s32.totalorder %s2170_s15, %s2843_s16  ;;  %p2849_p12 = scmp.lt.s32.totalorder %s2843_s16, %s2843_s16 }
 0xe4b   :  { %p2850_p13 = por %p2849_p12, %p2848_p11 }
 0xe4d   :  { %p2851_p0 = pnand %p2850_p13, %p2844_p10 }
 0xeee   :  { %v2152_v3 = vpop.f32.mrb[14].mxu1 }
 0xeef   :  { %v2156_v7 = vmax.f32 %v2152_v3, 0.0  ;;  %v2625_v35 = vpop.f32.mrb[15].mxu1 }
 0xef1   :  { %v2157_v37 = vadd.f32 %v3344_v59, %v2156_v7 }
 0xef3   :  { %v2158_v52 = vadd.f32 %v2776_v43, %v2157_v37 }
 0xef5   :  { %2159 = vst [vmem:[#allocation3] sm:$0xff] %v2158_v52 }
 0xef6   :  { %2854 = shalt.err (!%p2851_p0)
}
 0xef7   :  { %s2855_s4 = scalar_lea.hbm %s3053_s17, 128 }
 0xef8   :  { %p2856_p1 = scmp.ne.s32.totalorder %s3053_s17, %s2855_s4  ;;  %p2859_p2 = scmp.lt.u32.totalorder %s2855_s4, %s3053_s17 }
 0xefa   :  { %p2861_p3 = pnand %p2859_p2, %p2856_p1 }
 0xefc   :  { %2864 = shalt.err (!%p2861_p3)
}
 0xefd   :  { %2172 = dma.vmem_to_hbm [thread:$0]  %s2170_s15, 128, %s3053_s17, [#allocation4]  }
 0xefe   :  { %2865 = dma.done.wait [#allocation4], 128  }
 0xeff   :  { %2866 = vsyncadd [#allocation4], 4294967168 }
 0xf00   :  { %2867 = dma.done.wait [#allocation6], 256  }
 0xf01   :  { %2868 = vsyncadd [#allocation6], 4294967040 }
 0xf02   :  { %2869 = dma.done.wait [#allocation9], 128  }
 0xf03   :  { %2870 = vsyncadd [#allocation9], 4294967168 }
 0xf04   :  { %2215 = vsyncpa [#allocation4], 1 }
 0xf05   :  { %2216 = vsyncpa [#allocation6], 1 }
 0xf06   :  { %2217 = vsyncpa [#allocation9], 1 }

</bundles_post_ra>
